<compile_context>
chip_gen: v6e
topology: v6e:2x2x1
jax: 0.10.0
libtpu: 0.0.40
codegen_flags: <defaults>
</compile_context>

<pallas_src>
import jax
import jax.numpy as jnp
from jax.experimental import pallas as pl
from jax.experimental.pallas import tpu as pltpu


# ---------------------------------------------------------------------------
# Helpers
# ---------------------------------------------------------------------------

_POS_KEYS = ("xmin", "ymin", "xmax", "ymax", "area")

# Column layout of the packed (H, 16) parameter slab.
_B_IMG, _G_IMG, _BE_IMG = 0, 1, 2
_B_OBJ, _G_OBJ, _BE_OBJ = 3, 4, 5
_B_P2, _G_POS, _BE_POS = 6, 7, 8
_G_OUT, _BE_OUT, _MASK_PROJ = 9, 10, 11
_VEC_SLAB_COLS = 16


def _round_up(x, m):
    return ((x + m - 1) // m) * m


def _layer_norm_cols(x, gamma, beta, eps=1e-12):
    """LayerNorm over axis 0 (hidden on sublanes). x:(H,T) f32, gamma/beta:(H,1)."""
    mu = jnp.mean(x, axis=0, keepdims=True)
    xc = x - mu
    var = jnp.mean(xc * xc, axis=0, keepdims=True)
    return xc * jax.lax.rsqrt(var + eps) * gamma + beta


# ---------------------------------------------------------------------------
# Pallas kernel (transposed / lane-dense layout: tokens on the lane axis)
# ---------------------------------------------------------------------------

def image_embedder_kernel(cat_ref, aux_ref,
                          w_bd_ref, w_p1_ref, w_p2_ref, b_p1_ref, vec_ref,
                          out_ref):
    f32 = jnp.float32
    H = out_ref.shape[0]

    vecs = vec_ref[...]                                   # (H, 16) f32
    col = lambda j: vecs[:, j:j + 1]                      # (H, 1)

    aux = aux_ref[...]                                    # (8, tm) f32: pos[0:5], mask[5]
    mask = aux[5:6, :]                                    # (1, tm), values in {0, 1}

    # ---- img + obj branches: one block-diagonal MXU pass, lane-dense -------
    h_bd = jnp.dot(w_bd_ref[...], cat_ref[...],
                   preferred_element_type=f32)            # (2H, tm) f32
    # mask-embedding add folded:  (x + m*r) @ W  ==  x@W + m*(r@W)   (exact)
    h_img = h_bd[:H] + col(_B_IMG) + mask * col(_MASK_PROJ)
    h_obj = h_bd[H:] + col(_B_OBJ)
    t_im = _layer_norm_cols(h_img, col(_G_IMG), col(_BE_IMG))
    t_obj = _layer_norm_cols(h_obj, col(_G_OBJ), col(_BE_OBJ))

    # ---- position branch (five Linear(1,16) folded into w_p1 at prep time) -
    h1 = jnp.dot(w_p1_ref[...], aux, preferred_element_type=f32) + b_p1_ref[...]
    h1 = jnp.maximum(h1, 0.0)                             # ReLU; Dropout = identity (eval)
    h2 = jnp.dot(w_p2_ref[...], h1.astype(w_p2_ref.dtype),
                 preferred_element_type=f32) + col(_B_P2)
    t_pos = _layer_norm_cols(h2, col(_G_POS), col(_BE_POS))

    # ---- combine + final LayerNorm (final dropout: identity in eval) -------
    emb = _layer_norm_cols(t_im + t_obj + t_pos, col(_G_OUT), col(_BE_OUT))
    out_ref[...] = emb.astype(out_ref.dtype)


# ---------------------------------------------------------------------------
# One-time parameter preparation (folds / transposes / casts hoisted here)
# ---------------------------------------------------------------------------

def prepare_params(params, *, compute_dtype=jnp.bfloat16):
    f32 = jnp.float32
    w_img = params["w_img"].astype(f32)          # (img_dim, H), stored (in, out)
    w_obj = params["w_obj"].astype(f32)          # (obj_dim, H)
    img_dim, H = w_img.shape
    obj_dim = w_obj.shape[0]

    # Block-diagonal [[W_img^T, 0], [0, W_obj^T]] -> one matmul for both branches.
    w_bd = jnp.zeros((2 * H, img_dim + obj_dim), f32)
    w_bd = w_bd.at[:H, :img_dim].set(w_img.T)
    w_bd = w_bd.at[H:, img_dim:].set(w_obj.T)

    # Five Linear(1,16) layers folded exactly into pos_linear's first Linear.
    w_loc = jnp.zeros((5, 16 * 5), f32)
    for i, k in enumerate(_POS_KEYS):
        w_loc = w_loc.at[i, i * 16:(i + 1) * 16].set(params[f"w_{k}"][0].astype(f32))
    b_loc = jnp.concatenate([params[f"b_{k}"].astype(f32) for k in _POS_KEYS])
    w_p1 = params["w_p1"].astype(f32)                      # (80, 128)
    w_p1f = (w_loc @ w_p1).T                               # (128, 5)
    b_p1f = b_loc @ w_p1 + params["b_p1"].astype(f32)      # (128,)
    # Zero-pad contraction to 8 rows so it consumes the (pos ‖ mask ‖ 0) stream.
    w_p1f = jnp.concatenate([w_p1f, jnp.zeros((w_p1f.shape[0], 3), f32)], axis=1)

    # Mask embedding: padding_idx=0 row is zero, only row 1 ever contributes;
    # folded into a rank-1 post-matmul term (kept in f32 for accuracy).
    mask_proj = params["mask_embedding"][1].astype(f32) @ w_img    # (H,)

    vec_cols = [params["b_img"], params["g_img"], params["be_img"],
                params["b_obj"], params["g_obj"], params["be_obj"],
                params["b_p2"], params["g_pos"], params["be_pos"],
                params["g_out"], params["be_out"], mask_proj]
    vec_cols = [c.astype(f32) for c in vec_cols]
    vec_cols += [jnp.zeros((H,), f32)] * (_VEC_SLAB_COLS - len(vec_cols))
    vecs = jnp.stack(vec_cols, axis=1)                     # (H, 16) f32

    return {
        "w_bd": w_bd.astype(compute_dtype),                # (2H, img_dim+obj_dim) bf16
        "w_p1": w_p1f,                                     # (128, 8) f32
        "b_p1": b_p1f.reshape(-1, 1),                      # (128, 1) f32
        "w_p2": params["w_p2"].astype(f32).T.astype(compute_dtype),   # (H, 128) bf16
        "vecs": vecs,                                      # (H, 16) f32
        "img_dim": img_dim, "obj_dim": obj_dim, "hidden": H,
    }


# ---------------------------------------------------------------------------
# Forward wrapper
# ---------------------------------------------------------------------------

def _choose_tile(M, requested=None):
    """Lane-axis tile: multiple of 128, as large as useful, but keep >= 2 grid
    steps whenever M allows (so v7x can shard across its 2 TensorCores)."""
    m128 = _round_up(max(M, 1), 128)
    tm = 1024 if requested is None else max(128, _round_up(requested, 128))
    tm = min(tm, m128)
    if m128 >= 256:
        tm = min(tm, max(128, (m128 // 2) // 128 * 128))
    return tm


def image_embedder_forward(prepared, img_feat, img_pos_feat, object_label_embeds,
                           img_masks=None, *, tm=None, out_dtype=jnp.float32):
    """Pallas implementation of ImageEmbedder.forward (eval mode).

    Pass out_dtype=jnp.bfloat16 if the consumer accepts bf16 embeddings
    (halves output HBM writeback / store-slot pressure)."""
    B, N, img_dim = img_feat.shape
    obj_dim = object_label_embeds.shape[-1]
    H = prepared["hidden"]
    cdt = prepared["w_bd"].dtype
    M = B * N

    # Transposed, lane-dense streams (tokens on the lane axis). The transpose is
    # fused by XLA into the cast copy that was already needed.
    cat_t = jnp.concatenate(
        [img_feat.reshape(M, img_dim).T,
         object_label_embeds.reshape(M, obj_dim).T], axis=0).astype(cdt)   # (112, M)
    pos_t = img_pos_feat.reshape(M, -1)[:, :5].astype(jnp.float32).T       # (5, M)
    if img_masks is not None:
        # NOTE: img_masks must be {0,1} (embedding lookup with padding_idx=0).
        mask_t = img_masks.reshape(1, M).astype(jnp.float32)
    else:
        mask_t = jnp.zeros((1, M), jnp.float32)
    aux_t = jnp.concatenate([pos_t, mask_t, jnp.zeros((2, M), jnp.float32)],
                            axis=0)                                         # (8, M)

    tm_ = _choose_tile(M, tm)
    M_pad = _round_up(M, tm_)
    if M_pad != M:
        # Padded columns only see LayerNorm of a constant bias vector (finite),
        # and are sliced off below.
        cat_t = jnp.pad(cat_t, ((0, 0), (0, M_pad - M)))
        aux_t = jnp.pad(aux_t, ((0, 0), (0, M_pad - M)))

    weights = [prepared["w_bd"], prepared["w_p1"], prepared["w_p2"],
               prepared["b_p1"], prepared["vecs"]]

    def col_spec(rows):
        return pl.BlockSpec((rows, tm_), lambda i: (0, i))

    def full_spec(a):
        return pl.BlockSpec(a.shape, lambda i: (0,) * a.ndim)

    in_specs = ([col_spec(img_dim + obj_dim), col_spec(8)]
                + [full_spec(a) for a in weights])

    # VMEM budget: double-buffered streams/output + params + temporaries + 8 MiB.
    nbytes = lambda a: int(a.size) * a.dtype.itemsize
    cbytes = jnp.dtype(cdt).itemsize
    obytes = jnp.dtype(out_dtype).itemsize
    need = (2 * tm_ * ((img_dim + obj_dim) * cbytes + 8 * 4 + H * obytes)
            + 2 * sum(nbytes(a) for a in weights)
            + tm_ * (128 * 4 + 2 * H * 4 + 6 * H * 4))      # in-kernel temporaries (est.)
    vmem_limit = int(need + (8 << 20))

    flops = 2 * M_pad * ((img_dim + obj_dim) * 2 * H + 8 * 128 + 128 * H)
    bytes_accessed = (M_pad * ((img_dim + obj_dim) * cbytes + 8 * 4 + H * obytes)
                      + sum(nbytes(a) for a in weights))

    out_t = pl.pallas_call(
        image_embedder_kernel,
        out_shape=jax.ShapeDtypeStruct((H, M_pad), out_dtype),
        grid_spec=pltpu.PrefetchScalarGridSpec(
            num_scalar_prefetch=0,
            grid=(M_pad // tm_,),
            in_specs=in_specs,
            out_specs=pl.BlockSpec((H, tm_), lambda i: (0, i)),
        ),
        compiler_params=pltpu.CompilerParams(
            dimension_semantics=("parallel",),
            vmem_limit_bytes=vmem_limit),
        cost_estimate=pl.CostEstimate(
            flops=int(flops),
            transcendentals=int(4 * M_pad),
            bytes_accessed=int(bytes_accessed)),
    )(cat_t, aux_t, *weights)

    # Wrapper-side layout plumbing back to (B, N, H).
    return out_t[:, :M].T.reshape(B, N, H)


# ---------------------------------------------------------------------------
# Pure-JAX reference (same precision policy: bf16 streams, f32 accumulate/LN;
# algebraically equal to the PyTorch forward in exact arithmetic)
# ---------------------------------------------------------------------------

def image_embedder_reference(params, img_feat, img_pos_feat, object_label_embeds,
                             img_masks=None, *, compute_dtype=jnp.bfloat16):
    bf, f32 = compute_dtype, jnp.float32

    def ln(x, g, b, eps=1e-12):
        mu = jnp.mean(x, -1, keepdims=True)
        var = jnp.mean((x - mu) ** 2, -1, keepdims=True)
        return (x - mu) * jax.lax.rsqrt(var + eps) * g + b

    h_img = jnp.dot(img_feat.astype(bf), params["w_img"].astype(bf),
                    preferred_element_type=f32) + params["b_img"]
    if img_masks is not None:
        mask_proj = params["mask_embedding"][1].astype(f32) @ params["w_img"].astype(f32)
        h_img = h_img + img_masks[..., None].astype(f32) * mask_proj
    t_im = ln(h_img, params["g_img"], params["be_img"])

    h_obj = jnp.dot(object_label_embeds.astype(bf), params["w_obj"].astype(bf),
                    preferred_element_type=f32) + params["b_obj"]
    t_obj = ln(h_obj, params["g_obj"], params["be_obj"])

    p = img_pos_feat[..., :5].astype(f32)
    locs = [p[..., i:i + 1] * params[f"w_{k}"][0] + params[f"b_{k}"]
            for i, k in enumerate(_POS_KEYS)]
    loc = jnp.concatenate(locs, -1)
    h1 = jnp.maximum(jnp.dot(loc, params["w_p1"].astype(f32),
                             preferred_element_type=f32) + params["b_p1"], 0.0)
    h2 = jnp.dot(h1.astype(bf), params["w_p2"].astype(bf),
                 preferred_element_type=f32) + params["b_p2"]
    t_pos = ln(h2, params["g_pos"], params["be_pos"])

    return ln(t_im + t_obj + t_pos, params["g_out"], params["be_out"])


# ---------------------------------------------------------------------------
# Main
# ---------------------------------------------------------------------------

if __name__ == "__main__":
    B, N = 2, 256          # batch, number of image regions (M=512 -> grid of 2)
    img_dim, obj_dim, H = 64, 48, 32

    key = jax.random.PRNGKey(0)
    ks = jax.random.split(key, 32)

    def w(k, shape, scale=0.02):
        return (scale * jax.random.normal(k, shape)).astype(jnp.float32)

    params = {
        # img_linear / obj_label_linear (stored as (in, out) for x @ W)
        "w_img": w(ks[0], (img_dim, H)), "b_img": w(ks[1], (H,)),
        "w_obj": w(ks[2], (obj_dim, H)), "b_obj": w(ks[3], (H,)),
        # LayerNorm params (randomized to actually exercise scale/shift)
        "g_img": 1.0 + 0.1 * jax.random.normal(ks[23], (H,)),
        "be_img": w(ks[24], (H,)),
        "g_obj": 1.0 + 0.1 * jax.random.normal(ks[25], (H,)),
        "be_obj": w(ks[26], (H,)),
        "g_pos": 1.0 + 0.1 * jax.random.normal(ks[27], (H,)),
        "be_pos": w(ks[28], (H,)),
        "g_out": 1.0 + 0.1 * jax.random.normal(ks[29], (H,)),
        "be_out": w(ks[30], (H,)),
        # per-coordinate Linear(1, 16)
        "w_xmin": w(ks[4], (1, 16)), "b_xmin": w(ks[5], (16,)),
        "w_ymin": w(ks[6], (1, 16)), "b_ymin": w(ks[7], (16,)),
        "w_xmax": w(ks[8], (1, 16)), "b_xmax": w(ks[9], (16,)),
        "w_ymax": w(ks[10], (1, 16)), "b_ymax": w(ks[11], (16,)),
        "w_area": w(ks[12], (1, 16)), "b_area": w(ks[13], (16,)),
        # pos_linear: Linear(80,128) -> ReLU -> Dropout -> Linear(128,H)
        "w_p1": w(ks[14], (80, 128)), "b_p1": w(ks[15], (128,)),
        "w_p2": w(ks[16], (128, H)), "b_p2": w(ks[17], (H,)),
        # mask embedding (2, img_dim); padding_idx=0 handled in prepare_params
        "mask_embedding": w(ks[18], (2, img_dim)),
    }

    img_feat = jax.random.normal(ks[19], (B, N, img_dim), jnp.float32)
    object_label_embeds = jax.random.normal(ks[20], (B, N, obj_dim), jnp.float32)
    img_pos_feat = jax.random.uniform(ks[21], (B, N, 7), jnp.float32)  # uses [..., :5]
    img_masks = (jax.random.uniform(ks[22], (B, N)) > 0.5).astype(jnp.int32)

    prepared = prepare_params(params)           # one-time parameter prep
    out = image_embedder_forward(prepared, img_feat, img_pos_feat,
                                 object_label_embeds, img_masks)
    out = jax.block_until_ready(out)

    ref = image_embedder_reference(params, img_feat, img_pos_feat,
                                   object_label_embeds, img_masks)
    assert out.shape == (B, N, H)
    assert bool(jnp.allclose(out, ref, rtol=2e-3, atol=2e-3)), "mismatch vs reference"

    print("KERNEL_OK")
</pallas_src>

<mosaic_0001>
module attributes {stable_mosaic.version = 11 : i64} {
  func.func @image_embedder_kernel(%arg0: i32, %arg1: memref<112x256xbf16, #tpu.memory_space<vmem>>, %arg2: memref<8x256xf32, #tpu.memory_space<vmem>>, %arg3: memref<64x112xbf16, #tpu.memory_space<vmem>>, %arg4: memref<128x8xf32, #tpu.memory_space<vmem>>, %arg5: memref<32x128xbf16, #tpu.memory_space<vmem>>, %arg6: memref<128x1xf32, #tpu.memory_space<vmem>>, %arg7: memref<32x16xf32, #tpu.memory_space<vmem>>, %arg8: memref<32x256xf32, #tpu.memory_space<vmem>>) attributes {dimension_semantics = [#tpu.dimension_semantics<parallel>], iteration_bounds = array<i64: 2>, scalar_prefetch = 0 : i64, scratch_operands = 0 : i64, tpu.core_type = #tpu.core_type<tc>, window_params = [{transform_indices = @transform_0, window_bounds = array<i64: 112, 256>}, {transform_indices = @transform_1, window_bounds = array<i64: 8, 256>}, {pipeline_mode = #tpu.pipeline_mode<synchronous>, transform_indices = @transform_2, window_bounds = array<i64: 64, 112>}, {pipeline_mode = #tpu.pipeline_mode<synchronous>, transform_indices = @transform_3, window_bounds = array<i64: 128, 8>}, {pipeline_mode = #tpu.pipeline_mode<synchronous>, transform_indices = @transform_4, window_bounds = array<i64: 32, 128>}, {pipeline_mode = #tpu.pipeline_mode<synchronous>, transform_indices = @transform_5, window_bounds = array<i64: 128, 1>}, {pipeline_mode = #tpu.pipeline_mode<synchronous>, transform_indices = @transform_6, window_bounds = array<i64: 32, 16>}, {transform_indices = @transform_7, window_bounds = array<i64: 32, 256>}]} {
    %c0 = arith.constant 0 : index
    %c0_0 = arith.constant 0 : index
    %0 = vector.load %arg7[%c0, %c0_0] : memref<32x16xf32, #tpu.memory_space<vmem>>, vector<32x16xf32>
    %c0_1 = arith.constant 0 : index
    %c0_2 = arith.constant 0 : index
    %1 = vector.load %arg2[%c0_1, %c0_2] : memref<8x256xf32, #tpu.memory_space<vmem>>, vector<8x256xf32>
    %2 = vector.extract_strided_slice %1 {offsets = [5, 0], sizes = [1, 256], strides = [1, 1]} : vector<8x256xf32> to vector<1x256xf32>
    %c0_3 = arith.constant 0 : index
    %c0_4 = arith.constant 0 : index
    %3 = vector.load %arg3[%c0_3, %c0_4] : memref<64x112xbf16, #tpu.memory_space<vmem>>, vector<64x112xbf16>
    %c0_5 = arith.constant 0 : index
    %c0_6 = arith.constant 0 : index
    %4 = vector.load %arg1[%c0_5, %c0_6] : memref<112x256xbf16, #tpu.memory_space<vmem>>, vector<112x256xbf16>
    %cst = arith.constant dense<0.000000e+00> : vector<64x256xf32>
    %5 = tpu.matmul %3, %4, %cst {dimension_numbers = #tpu.dot_dimension_numbers<[1], [0], [0], [1], [0, 0, 1, 1], [], []>} : vector<64x112xbf16>, vector<112x256xbf16>, vector<64x256xf32> -> vector<64x256xf32>
    %6 = vector.extract_strided_slice %5 {offsets = [0, 0], sizes = [32, 256], strides = [1, 1]} : vector<64x256xf32> to vector<32x256xf32>
    %7 = vector.extract_strided_slice %0 {offsets = [0, 0], sizes = [32, 1], strides = [1, 1]} : vector<32x16xf32> to vector<32x1xf32>
    %8 = vector.broadcast %7 : vector<32x1xf32> to vector<32x256xf32>
    %9 = arith.addf %6, %8 : vector<32x256xf32>
    %10 = vector.extract_strided_slice %0 {offsets = [0, 11], sizes = [32, 1], strides = [1, 1]} : vector<32x16xf32> to vector<32x1xf32>
    %11 = vector.broadcast %2 : vector<1x256xf32> to vector<32x256xf32>
    %12 = vector.broadcast %10 : vector<32x1xf32> to vector<32x256xf32>
    %13 = arith.mulf %11, %12 : vector<32x256xf32>
    %14 = arith.addf %9, %13 : vector<32x256xf32>
    %15 = vector.extract_strided_slice %5 {offsets = [32, 0], sizes = [32, 256], strides = [1, 1]} : vector<64x256xf32> to vector<32x256xf32>
    %16 = vector.extract_strided_slice %0 {offsets = [0, 3], sizes = [32, 1], strides = [1, 1]} : vector<32x16xf32> to vector<32x1xf32>
    %17 = vector.broadcast %16 : vector<32x1xf32> to vector<32x256xf32>
    %18 = arith.addf %15, %17 : vector<32x256xf32>
    %19 = vector.extract_strided_slice %0 {offsets = [0, 1], sizes = [32, 1], strides = [1, 1]} : vector<32x16xf32> to vector<32x1xf32>
    %20 = vector.extract_strided_slice %0 {offsets = [0, 2], sizes = [32, 1], strides = [1, 1]} : vector<32x16xf32> to vector<32x1xf32>
    %cst_7 = arith.constant dense<0.000000e+00> : vector<256xf32>
    %21 = vector.multi_reduction <add>, %14, %cst_7 [0] : vector<32x256xf32> to vector<256xf32>
    %22 = vector.shape_cast %21 : vector<256xf32> to vector<1x256xf32>
    %cst_8 = arith.constant 3.200000e+01 : f32
    %23 = vector.broadcast %cst_8 : f32 to vector<1x256xf32>
    %24 = arith.divf %22, %23 : vector<1x256xf32>
    %25 = vector.broadcast %24 : vector<1x256xf32> to vector<32x256xf32>
    %26 = arith.subf %14, %25 : vector<32x256xf32>
    %27 = arith.mulf %26, %26 : vector<32x256xf32>
    %cst_9 = arith.constant dense<0.000000e+00> : vector<256xf32>
    %28 = vector.multi_reduction <add>, %27, %cst_9 [0] : vector<32x256xf32> to vector<256xf32>
    %29 = vector.shape_cast %28 : vector<256xf32> to vector<1x256xf32>
    %cst_10 = arith.constant 3.200000e+01 : f32
    %30 = vector.broadcast %cst_10 : f32 to vector<1x256xf32>
    %31 = arith.divf %29, %30 : vector<1x256xf32>
    %cst_11 = arith.constant 9.99999996E-13 : f32
    %32 = vector.broadcast %cst_11 : f32 to vector<1x256xf32>
    %33 = arith.addf %31, %32 : vector<1x256xf32>
    %34 = math.rsqrt %33 : vector<1x256xf32>
    %35 = vector.broadcast %34 : vector<1x256xf32> to vector<32x256xf32>
    %36 = arith.mulf %26, %35 : vector<32x256xf32>
    %37 = vector.broadcast %19 : vector<32x1xf32> to vector<32x256xf32>
    %38 = arith.mulf %36, %37 : vector<32x256xf32>
    %39 = vector.broadcast %20 : vector<32x1xf32> to vector<32x256xf32>
    %40 = arith.addf %38, %39 : vector<32x256xf32>
    %41 = vector.extract_strided_slice %0 {offsets = [0, 4], sizes = [32, 1], strides = [1, 1]} : vector<32x16xf32> to vector<32x1xf32>
    %42 = vector.extract_strided_slice %0 {offsets = [0, 5], sizes = [32, 1], strides = [1, 1]} : vector<32x16xf32> to vector<32x1xf32>
    %cst_12 = arith.constant dense<0.000000e+00> : vector<256xf32>
    %43 = vector.multi_reduction <add>, %18, %cst_12 [0] : vector<32x256xf32> to vector<256xf32>
    %44 = vector.shape_cast %43 : vector<256xf32> to vector<1x256xf32>
    %cst_13 = arith.constant 3.200000e+01 : f32
    %45 = vector.broadcast %cst_13 : f32 to vector<1x256xf32>
    %46 = arith.divf %44, %45 : vector<1x256xf32>
    %47 = vector.broadcast %46 : vector<1x256xf32> to vector<32x256xf32>
    %48 = arith.subf %18, %47 : vector<32x256xf32>
    %49 = arith.mulf %48, %48 : vector<32x256xf32>
    %cst_14 = arith.constant dense<0.000000e+00> : vector<256xf32>
    %50 = vector.multi_reduction <add>, %49, %cst_14 [0] : vector<32x256xf32> to vector<256xf32>
    %51 = vector.shape_cast %50 : vector<256xf32> to vector<1x256xf32>
    %cst_15 = arith.constant 3.200000e+01 : f32
    %52 = vector.broadcast %cst_15 : f32 to vector<1x256xf32>
    %53 = arith.divf %51, %52 : vector<1x256xf32>
    %cst_16 = arith.constant 9.99999996E-13 : f32
    %54 = vector.broadcast %cst_16 : f32 to vector<1x256xf32>
    %55 = arith.addf %53, %54 : vector<1x256xf32>
    %56 = math.rsqrt %55 : vector<1x256xf32>
    %57 = vector.broadcast %56 : vector<1x256xf32> to vector<32x256xf32>
    %58 = arith.mulf %48, %57 : vector<32x256xf32>
    %59 = vector.broadcast %41 : vector<32x1xf32> to vector<32x256xf32>
    %60 = arith.mulf %58, %59 : vector<32x256xf32>
    %61 = vector.broadcast %42 : vector<32x1xf32> to vector<32x256xf32>
    %62 = arith.addf %60, %61 : vector<32x256xf32>
    %c0_17 = arith.constant 0 : index
    %c0_18 = arith.constant 0 : index
    %63 = vector.load %arg4[%c0_17, %c0_18] : memref<128x8xf32, #tpu.memory_space<vmem>>, vector<128x8xf32>
    %cst_19 = arith.constant dense<0.000000e+00> : vector<128x256xf32>
    %64 = tpu.matmul %63, %1, %cst_19 {dimension_numbers = #tpu.dot_dimension_numbers<[1], [0], [0], [1], [0, 0, 1, 1], [], []>} : vector<128x8xf32>, vector<8x256xf32>, vector<128x256xf32> -> vector<128x256xf32>
    %c0_20 = arith.constant 0 : index
    %c0_21 = arith.constant 0 : index
    %65 = vector.load %arg6[%c0_20, %c0_21] : memref<128x1xf32, #tpu.memory_space<vmem>>, vector<128x1xf32>
    %66 = vector.broadcast %65 : vector<128x1xf32> to vector<128x256xf32>
    %67 = arith.addf %64, %66 : vector<128x256xf32>
    %cst_22 = arith.constant 0.000000e+00 : f32
    %68 = vector.broadcast %cst_22 : f32 to vector<128x256xf32>
    %69 = arith.maximumf %67, %68 : vector<128x256xf32>
    %c0_23 = arith.constant 0 : index
    %c0_24 = arith.constant 0 : index
    %70 = vector.load %arg5[%c0_23, %c0_24] : memref<32x128xbf16, #tpu.memory_space<vmem>>, vector<32x128xbf16>
    %71 = arith.truncf %69 : vector<128x256xf32> to vector<128x256xbf16>
    %cst_25 = arith.constant dense<0.000000e+00> : vector<32x256xf32>
    %72 = tpu.matmul %70, %71, %cst_25 {dimension_numbers = #tpu.dot_dimension_numbers<[1], [0], [0], [1], [0, 0, 1, 1], [], []>} : vector<32x128xbf16>, vector<128x256xbf16>, vector<32x256xf32> -> vector<32x256xf32>
    %73 = vector.extract_strided_slice %0 {offsets = [0, 6], sizes = [32, 1], strides = [1, 1]} : vector<32x16xf32> to vector<32x1xf32>
    %74 = vector.broadcast %73 : vector<32x1xf32> to vector<32x256xf32>
    %75 = arith.addf %72, %74 : vector<32x256xf32>
    %76 = vector.extract_strided_slice %0 {offsets = [0, 7], sizes = [32, 1], strides = [1, 1]} : vector<32x16xf32> to vector<32x1xf32>
    %77 = vector.extract_strided_slice %0 {offsets = [0, 8], sizes = [32, 1], strides = [1, 1]} : vector<32x16xf32> to vector<32x1xf32>
    %cst_26 = arith.constant dense<0.000000e+00> : vector<256xf32>
    %78 = vector.multi_reduction <add>, %75, %cst_26 [0] : vector<32x256xf32> to vector<256xf32>
    %79 = vector.shape_cast %78 : vector<256xf32> to vector<1x256xf32>
    %cst_27 = arith.constant 3.200000e+01 : f32
    %80 = vector.broadcast %cst_27 : f32 to vector<1x256xf32>
    %81 = arith.divf %79, %80 : vector<1x256xf32>
    %82 = vector.broadcast %81 : vector<1x256xf32> to vector<32x256xf32>
    %83 = arith.subf %75, %82 : vector<32x256xf32>
    %84 = arith.mulf %83, %83 : vector<32x256xf32>
    %cst_28 = arith.constant dense<0.000000e+00> : vector<256xf32>
    %85 = vector.multi_reduction <add>, %84, %cst_28 [0] : vector<32x256xf32> to vector<256xf32>
    %86 = vector.shape_cast %85 : vector<256xf32> to vector<1x256xf32>
    %cst_29 = arith.constant 3.200000e+01 : f32
    %87 = vector.broadcast %cst_29 : f32 to vector<1x256xf32>
    %88 = arith.divf %86, %87 : vector<1x256xf32>
    %cst_30 = arith.constant 9.99999996E-13 : f32
    %89 = vector.broadcast %cst_30 : f32 to vector<1x256xf32>
    %90 = arith.addf %88, %89 : vector<1x256xf32>
    %91 = math.rsqrt %90 : vector<1x256xf32>
    %92 = vector.broadcast %91 : vector<1x256xf32> to vector<32x256xf32>
    %93 = arith.mulf %83, %92 : vector<32x256xf32>
    %94 = vector.broadcast %76 : vector<32x1xf32> to vector<32x256xf32>
    %95 = arith.mulf %93, %94 : vector<32x256xf32>
    %96 = vector.broadcast %77 : vector<32x1xf32> to vector<32x256xf32>
    %97 = arith.addf %95, %96 : vector<32x256xf32>
    %98 = arith.addf %40, %62 : vector<32x256xf32>
    %99 = arith.addf %98, %97 : vector<32x256xf32>
    %100 = vector.extract_strided_slice %0 {offsets = [0, 9], sizes = [32, 1], strides = [1, 1]} : vector<32x16xf32> to vector<32x1xf32>
    %101 = vector.extract_strided_slice %0 {offsets = [0, 10], sizes = [32, 1], strides = [1, 1]} : vector<32x16xf32> to vector<32x1xf32>
    %cst_31 = arith.constant dense<0.000000e+00> : vector<256xf32>
    %102 = vector.multi_reduction <add>, %99, %cst_31 [0] : vector<32x256xf32> to vector<256xf32>
    %103 = vector.shape_cast %102 : vector<256xf32> to vector<1x256xf32>
    %cst_32 = arith.constant 3.200000e+01 : f32
    %104 = vector.broadcast %cst_32 : f32 to vector<1x256xf32>
    %105 = arith.divf %103, %104 : vector<1x256xf32>
    %106 = vector.broadcast %105 : vector<1x256xf32> to vector<32x256xf32>
    %107 = arith.subf %99, %106 : vector<32x256xf32>
    %108 = arith.mulf %107, %107 : vector<32x256xf32>
    %cst_33 = arith.constant dense<0.000000e+00> : vector<256xf32>
    %109 = vector.multi_reduction <add>, %108, %cst_33 [0] : vector<32x256xf32> to vector<256xf32>
    %110 = vector.shape_cast %109 : vector<256xf32> to vector<1x256xf32>
    %cst_34 = arith.constant 3.200000e+01 : f32
    %111 = vector.broadcast %cst_34 : f32 to vector<1x256xf32>
    %112 = arith.divf %110, %111 : vector<1x256xf32>
    %cst_35 = arith.constant 9.99999996E-13 : f32
    %113 = vector.broadcast %cst_35 : f32 to vector<1x256xf32>
    %114 = arith.addf %112, %113 : vector<1x256xf32>
    %115 = math.rsqrt %114 : vector<1x256xf32>
    %116 = vector.broadcast %115 : vector<1x256xf32> to vector<32x256xf32>
    %117 = arith.mulf %107, %116 : vector<32x256xf32>
    %118 = vector.broadcast %100 : vector<32x1xf32> to vector<32x256xf32>
    %119 = arith.mulf %117, %118 : vector<32x256xf32>
    %120 = vector.broadcast %101 : vector<32x1xf32> to vector<32x256xf32>
    %121 = arith.addf %119, %120 : vector<32x256xf32>
    %c0_36 = arith.constant 0 : index
    %c0_37 = arith.constant 0 : index
    %122 = vector.load %arg8[%c0_36, %c0_37] : memref<32x256xf32, #tpu.memory_space<vmem>>, vector<32x256xf32>
    tpu.vector_store %arg8[%c0_36, %c0_37], %121 {strides = array<i32>} : memref<32x256xf32, #tpu.memory_space<vmem>>, vector<32x256xf32>,
    return
  }
  func.func @transform_0(%arg0: i32) -> (i32, i32) {
    %c0_i32 = arith.constant 0 : i32
    %c0_i32_0 = arith.constant 0 : i32
    return %c0_i32, %arg0 : i32, i32
  }
  func.func @transform_1(%arg0: i32) -> (i32, i32) {
    %c0_i32 = arith.constant 0 : i32
    %c0_i32_0 = arith.constant 0 : i32
    return %c0_i32, %arg0 : i32, i32
  }
  func.func @transform_2(%arg0: i32) -> (i32, i32) {
    %c0_i32 = arith.constant 0 : i32
    %c0_i32_0 = arith.constant 0 : i32
    %c0_i32_1 = arith.constant 0 : i32
    return %c0_i32, %c0_i32_0 : i32, i32
  }
  func.func @transform_3(%arg0: i32) -> (i32, i32) {
    %c0_i32 = arith.constant 0 : i32
    %c0_i32_0 = arith.constant 0 : i32
    %c0_i32_1 = arith.constant 0 : i32
    return %c0_i32, %c0_i32_0 : i32, i32
  }
  func.func @transform_4(%arg0: i32) -> (i32, i32) {
    %c0_i32 = arith.constant 0 : i32
    %c0_i32_0 = arith.constant 0 : i32
    %c0_i32_1 = arith.constant 0 : i32
    return %c0_i32, %c0_i32_0 : i32, i32
  }
  func.func @transform_5(%arg0: i32) -> (i32, i32) {
    %c0_i32 = arith.constant 0 : i32
    %c0_i32_0 = arith.constant 0 : i32
    %c0_i32_1 = arith.constant 0 : i32
    return %c0_i32, %c0_i32_0 : i32, i32
  }
  func.func @transform_6(%arg0: i32) -> (i32, i32) {
    %c0_i32 = arith.constant 0 : i32
    %c0_i32_0 = arith.constant 0 : i32
    %c0_i32_1 = arith.constant 0 : i32
    return %c0_i32, %c0_i32_0 : i32, i32
  }
  func.func @transform_7(%arg0: i32) -> (i32, i32) {
    %c0_i32 = arith.constant 0 : i32
    %c0_i32_0 = arith.constant 0 : i32
    return %c0_i32, %arg0 : i32, i32
  }
}

</mosaic_0001>

<bundles_post_ra>
// kernel: tpu_custom_call.1
= control target key start
LH: loop header
LB: loop body
LE: loop exit
PB: predicated region body
PF: predicated region fallthrough
CT: control target
= control target key end

     0   :  { %12 = vsyncpa [#allocation4], 0  ;;  %s2751_s0 = inlined_call_operand.vmem [shape: bf16[112,512], index: 0, kind: input, shape index: {}]   ;;  %s2752_s1 = inlined_call_operand.vmem [shape: f32[8,512], index: 1, kind: input, shape index: {}]   ;;  %s2753_s2 = inlined_call_operand.vmem [shape: bf16[64,112], index: 2, kind: input, shape index: {}]   ;;  %s2754_s3 = inlined_call_operand.vmem [shape: f32[128,8], index: 3, kind: input, shape index: {}]   ;;  %s2755_s4 = inlined_call_operand.vmem [shape: bf16[32,128], index: 4, kind: input, shape index: {}]   ;;  %s2756_s5 = inlined_call_operand.vmem [shape: f32[128,1], index: 5, kind: input, shape index: {}]   ;;  %s2757_s6 = inlined_call_operand.vmem [shape: f32[32,16], index: 6, kind: input, shape index: {}]   ;;  %s2758_s7 = inlined_call_operand.hbm [shape: f32[32,512], index: 7, kind: output, shape index: {}]  }
   0x1   :  { %14 = vsyncpa [#allocation4 + $0x1], 0  ;;  %s2050_s24 = smov 0   ;;  %s2052_s25 = smov 0  }
   0x2   :  { %s2054_s26 = smov 0   ;;  %s2056_s27 = smov 0  }
   0x3 LB: > { %s2071_s28 = sadd.s32 4294967295, %s1991_s27   ;;  %s1724_s29 = sadd.s32 4294967294, %s1991_s27   ;;  %s1991_s27 = sphi %s2056_s27, %s2764_s27   ;;  %s1987_s26 = sphi %s2054_s26, %s2763_s26   ;;  %s1983_s25 = sphi %s2052_s25, %s2762_s25   ;;  %s1979_s24 = sphi %s2050_s24, %s2761_s24  }
   0x4   : > { %s2075_s30 = sadd.s32 1, %s1991_s27   ;;  %s27_s8 = sadd.s32 1, %s1987_s26 }
   0x5   : > { %s24_s9 = ssub.s32 %s1991_s27, %s2075_s30  ;;  %p34_p0 = scmp.ne.s32.totalorder %s1987_s26, %s1983_s25 }
   0x6   : > { %p25_p1 = scmp.eq.s32.totalorder %s24_s9, 0  ;;  %p35_p2 = scmp.eq.s32.totalorder %s1991_s27, 0 }
   0x7   : > { %p195_p3 = scmp.eq.s32.totalorder %s2071_s28, 1  ;;  %p200_p4 = scmp.ne.s32.totalorder %s1983_s25, %s1979_s24 }
   0x8   : > { %s2087_s10 = scalar_select %p25_p1, %s1987_s26, %s27_s8  }
   0x9   : > { %p36_p5 = por %p35_p2, %p34_p0  ;;  %p2089_p6 = por %p195_p3, %p34_p0 }
   0xa   : > { %p201_p7 = scmp.eq.s32.totalorder %s1724_s29, 1  ;;  %p1726_p9 = scmp.ge.s32.totalorder %s1991_s27, 2 }
   0xc   : > { %p2093_p8 = por %p201_p7, %p200_p4  ;;  %232 = sbr.rel (%p1726_p9) target bundleno = 28 (0x1c), region = 36 }
  0x11   : > { %235 = sbr.rel (!%p36_p5) target bundleno = 28 (0x1c), region = 40  ;;  %s237_s13 = sand.u32 (%p36_p5), 1, %s1987_s26  }
  0x12   : > { %s1778_s14 = sshll.u32 (%p36_p5), %s1991_s27, 3  ;;  %s1796_s15 = smul.u32 (%p36_p5), 112, %s237_s13 }
  0x13   : > { %s242_s18 = scalar_lea.vmem (%p36_p5), %s2751_s0, %s1778_s14 }
  0x14   : > { %v297_v0 = vld [vmem:[%s242_s18] sm:$0xff] (%p36_p5)  ;;  %v299_v1 = vld [vmem:[%s242_s18 + $0x10] sm:$0xff] (%p36_p5)  ;;  %s239_s19 = scalar_lea.vmem (%p36_p5), [#allocation2], %s1796_s15 }
  0x15   : > { %v301_v2 = vld [vmem:[%s242_s18 + $0x20] sm:$0xff] (%p36_p5)  ;;  %v303_v3 = vld [vmem:[%s242_s18 + $0x30] sm:$0xff] (%p36_p5)  ;;  %298 = vst [vmem:[%s239_s19] sm:$0xff] (%p36_p5), %v297_v0  ;;  %300 = vst [vmem:[%s239_s19 + $0x8] sm:$0xff] (%p36_p5), %v299_v1 }
  0x16   : > { %v305_v4 = vld [vmem:[%s242_s18 + $0x40] sm:$0xff]  ;;  %v307_v5 = vld [vmem:[%s242_s18 + $0x50] sm:$0xff]  ;;  %302 = vst [vmem:[%s239_s19 + $0x10] sm:$0xff] %v301_v2  ;;  %304 = vst [vmem:[%s239_s19 + $0x18] sm:$0xff] %v303_v3 }
  0x17   : > { %306 = vst [vmem:[%s239_s19 + $0x20] sm:$0xff] %v305_v4  ;;  %308 = vst [vmem:[%s239_s19 + $0x28] sm:$0xff] %v307_v5  ;;  %v309_v6 = vld [vmem:[%s242_s18 + $0x60] sm:$0xff]  ;;  %v311_v7 = vld [vmem:[%s242_s18 + $0x70] sm:$0xff] }
  0x18   : > { %v313_v8 = vld [vmem:[%s242_s18 + $0x80] sm:$0xff]  ;;  %310 = vst [vmem:[%s239_s19 + $0x30] sm:$0xff] %v309_v6  ;;  %312 = vst [vmem:[%s239_s19 + $0x38] sm:$0xff] %v311_v7  ;;  %v315_v9 = vld [vmem:[%s242_s18 + $0x90] sm:$0xff] }
  0x19   : > { %314 = vst [vmem:[%s239_s19 + $0x40] sm:$0xff] %v313_v8  ;;  %v317_v10 = vld [vmem:[%s242_s18 + $0xa0] sm:$0xff]  ;;  %v319_v11 = vld [vmem:[%s242_s18 + $0xb0] sm:$0xff]  ;;  %316 = vst [vmem:[%s239_s19 + $0x48] sm:$0xff] %v315_v9 }
  0x1a   : > { %318 = vst [vmem:[%s239_s19 + $0x50] sm:$0xff] %v317_v10  ;;  %320 = vst [vmem:[%s239_s19 + $0x58] sm:$0xff] %v319_v11  ;;  %v321_v12 = vld [vmem:[%s242_s18 + $0xc0] sm:$0xff]  ;;  %v323_v13 = vld [vmem:[%s242_s18 + $0xd0] sm:$0xff] }
  0x1b   : > { %322 = vst [vmem:[%s239_s19 + $0x60] sm:$0xff] %v321_v12  ;;  %324 = vst [vmem:[%s239_s19 + $0x68] sm:$0xff] %v323_v13 }
  0x1c PF: > { %p1729_p10 = scmp.ge.s32.totalorder %s1991_s27, 1  ;;  %p338_p11 = scmp.lt.s32.totalorder %s1991_s27, 3 }
  0x1e   : > { %p339_p12 = pnand %p1729_p10, %p338_p11 }
  0x1f   : > { %s2108_s20 = sand.u32 (!%p339_p12), 1, %s1983_s25   ;;  %s1731_s21 = sshll.u32 (!%p339_p12), %s2071_s28, 1 }
  0x20   : > { %342 = sbr.rel (%p339_p12) target bundleno = 689 (0x2b1), region = 82  ;;  %p383_p13 = scmp.lt.s32.totalorder (!%p339_p12), %s1731_s21, 3 }
  0x21   : > { %s1797_s22 = smul.u32 (!%p339_p12), 112, %s2108_s20  ;;  %s1779_s9 = sshll.u32 (!%p339_p12), %s2071_s28, 8 }
  0x22   : > { %s2708_s14 = scalar_lea.hbm (!%p339_p12), %s2758_s7, %s1779_s9  ;;  %s2006_s17 = smov (!%p339_p12), [#allocation3]  }
  0x23   : > { %s2116_s23 = scalar_lea.vmem (!%p339_p12), [#allocation2], %s1797_s22  ;;  %s1935_s18 = sshll.u32 (!%p339_p12), %s2006_s17, 4  ;;  %s1936_s18 = int_to_ptr.vmem [resolvable:$false] %s1935_s18 }
  0x24   : > { %s1937_s19 = scalar_lea.vmem (!%p339_p12), %s1936_s18, 2048 }
  0x25   : > { %v1993_v14 = vmov 0.0   ;;  %v1994_v15 = vmov 0   ;;  %v1888_v16 = vld [vmem:[%s2116_s23 + $0x64] ss:$8 sps:$4 sm:$0xff]   ;;  %s2766_s21 = smov (!%p383_p13, %s1731_s21), 3  ;;  %vm1031_vm0 = vcmask 64512  }
  0x26   : > { %1144 = vmatprep.mubr.f32.mxu1 %v1993_v14  ;;  %553 = vmatprep.mubr.bf16.mxu0 %v1994_v15  ;;  %v1890_v17 = vld [vmem:[%s2116_s23 + $0x60] ss:$8 sps:$4 sm:$0xff]   ;;  %s1732_s29 = sshll.u32 %s2766_s21, 3  ;;  %v1891_v19 = vld [vmem:[%s2116_s23 + $0x54] ss:$8 sps:$4 sm:$0xff]   ;;  %vm508_vm1 = vcmask 916480  }
  0x27   : > { %1854 = vset.pattern.permute.xlu1 %v1994_v15  ;;  %1853 = vset.pattern.permute.xlu0 %v1994_v15  ;;  %v919_v18 = vld [vmem:[%s2754_s3] sm:$0xff]  ;;  %s386_s15 = scalar_lea.vmem %s2752_s1, %s1732_s29  ;;  %v920_v25 = vld [vmem:[%s2754_s3 + $0x8] sm:$0xff]  ;;  %v921_v29 = vld [vmem:[%s2754_s3 + $0x10] sm:$0xff]  ;;  %v1995_v1 = vmov 11   ;;  %v1996_v6 = vmov 3   ;;  %v1997_v10 = vmov 6  }
  0x28   : > { %523 = vmatprep.subr.bf16.mxu0 %v1888_v16  ;;  %v1893_v20 = vld [vmem:[%s2116_s23 + $0x50] ss:$8 sps:$4 sm:$0xff]   ;;  %v1894_v21 = vld [vmem:[%s2116_s23 + $0x44] ss:$8 sps:$4 sm:$0xff]   ;;  %v1896_v24 = vld [vmem:[%s2116_s23 + $0x40] ss:$8 sps:$4 sm:$0xff]  }
  0x29   : > { %524 = vmatpush1.bf16.msra.mxu0 %v1890_v17  ;;  %v2129_v22 = vld [vmem:[%s386_s15 + $0x8] sm:$0xff]  ;;  %v2131_v23 = vld [vmem:[%s386_s15] sm:$0xff]  ;;  %v949_v31 = vld [vmem:[%s2756_s5 + $0x70] sm:$0xff]  ;;  %v1998_v11 = vmov 2   ;;  %v1999_v12 = vmov 1   ;;  %v2000_v13 = vmov 4  }
  0x2a   : > { %525 = vmatprep.subr.bf16.mxu0 %v1891_v19  ;;  %1110 = vmatprep.subr.mxu1 %v2129_v22  ;;  %v1897_v26 = vld [vmem:[%s2116_s23 + $0x34] ss:$8 sps:$4 sm:$0xff]   ;;  %v1899_v27 = vld [vmem:[%s2116_s23 + $0x30] ss:$8 sps:$4 sm:$0xff]   ;;  %v1900_v30 = vld [vmem:[%s2116_s23 + $0x24] ss:$8 sps:$4 sm:$0xff]  }
  0x2b   : > { %1111 = vmatpush1.msra.mxu1 %v2131_v23  ;;  %v947_v28 = vld [vmem:[%s2756_s5 + $0x60] sm:$0xff]  ;;  %1023 = vperm.xlu0 %1853, %v949_v31   ;;  %v948_v32 = vld [vmem:[%s2756_s5 + $0x68] sm:$0xff]  ;;  %v950_v33 = vld [vmem:[%s2756_s5 + $0x78] sm:$0xff]  ;;  %v2003_v16 = vmov 7   ;;  %s1730_s29 = sshll.u32 %s2108_s20, 6  ;;  %s1631_s15 = scalar_lea.sflag [#allocation4], %s2108_s20 }
  0x2c   : > { %1755 = vmatmul.mubr.msk.f32.vlgmr.msra.gmra.mxu1 %vm1031_vm0, %v919_v18  ;;  %1013 = vperm.xlu1 %1854, %v947_v28   ;;  %v922_v34 = vld [vmem:[%s2754_s3 + $0x18] sm:$0xff]  ;;  %v945_v38 = vld [vmem:[%s2756_s5 + $0x50] sm:$0xff]  ;;  %v923_v40 = vld [vmem:[%s2754_s3 + $0x20] sm:$0xff]  ;;  %s380_s8 = scalar_lea.vmem [#allocation3], %s1730_s29 }
  0x2d   : > { %526 = vmatpush1.bf16.msra.mxu0 %v1893_v20  ;;  %1150 = vmatprep.mubr.f32.mxu1 %v1993_v14  ;;  %v1902_v35 = vld [vmem:[%s2116_s23 + $0x20] ss:$8 sps:$4 sm:$0xff]   ;;  %v1903_v36 = vld [vmem:[%s2116_s23 + $0x14] ss:$8 sps:$4 sm:$0xff]   ;;  %v1905_v39 = vld [vmem:[%s2116_s23 + $0x10] ss:$8 sps:$4 sm:$0xff]  }
  0x2e   : > { %527 = vmatprep.subr.bf16.mxu0 %v1894_v21  ;;  %v946_v37 = vld [vmem:[%s2756_s5 + $0x58] sm:$0xff]  ;;  %v944_v42 = vld [vmem:[%s2756_s5 + $0x48] sm:$0xff]  ;;  %v943_v43 = vld [vmem:[%s2756_s5 + $0x40] sm:$0xff] }
  0x2f   : > { %1028 = vperm.xlu0 %1853, %v950_v33   ;;  %v1906_v41 = vld [vmem:[%s2116_s23 + $0x4] ss:$8 sps:$4 sm:$0xff]   ;;  %v1908_v44 = vld [vmem:[%s2116_s23] ss:$8 sps:$4 sm:$0xff]   ;;  %v2004_v33 = vmov 9   ;;  %s1644_s23 = sshll.u32 %s380_s8, 4  ;;  %s2703_s23 = int_to_ptr.vmem [resolvable:$true] %s1644_s23 }
  0x30   : > { %1756 = vmatmul.mubr.msk.f32.gmra.mxu1 %vm1031_vm0, %v920_v25  ;;  %1018 = vperm.xlu1 %1854, %v948_v32   ;;  %v924_v45 = vld [vmem:[%s2754_s3 + $0x28] sm:$0xff]  ;;  %v1909_v46 = vld [vmem:[%s2753_s2] sm:$0xff]   ;;  %v942_v47 = vld [vmem:[%s2756_s5 + $0x38] sm:$0xff]  ;;  %s1931_s16 = scalar_lea.vmem %s2703_s23, 1024  ;;  %p1938_p3 = scmp.lt.s32.totalorder %s2703_s23, %s1936_s18 }
  0x31   : > { %528 = vmatpush1.bf16.msra.mxu0 %v1896_v24  ;;  %1156 = vmatprep.mubr.f32.mxu1 %v1993_v14  ;;  %v941_v48 = vld [vmem:[%s2756_s5 + $0x30] sm:$0xff]  ;;  %v940_v50 = vld [vmem:[%s2756_s5 + $0x28] sm:$0xff]  ;;  %v939_v51 = vld [vmem:[%s2756_s5 + $0x20] sm:$0xff]  ;;  %p1932_p0 = scmp.ne.s32.totalorder %s2703_s23, %s1931_s16  ;;  %p1939_p4 = scmp.lt.s32.totalorder %s1937_s19, %s1931_s16 }
  0x32   : > { %529 = vmatprep.subr.bf16.mxu0 %v1897_v26  ;;  %v925_v49 = vld [vmem:[%s2754_s3 + $0x30] sm:$0xff]  ;;  %v926_v52 = vld [vmem:[%s2754_s3 + $0x38] sm:$0xff]  ;;  %v1910_v53 = vld [vmem:[%s2753_s2 + $0x8] sm:$0xff]  }
  0x33   : > { %1003 = vperm.xlu0 %1853, %v945_v38   ;;  %v938_v54 = vld [vmem:[%s2756_s5 + $0x18] sm:$0xff]  ;;  %v937_v55 = vld [vmem:[%s2756_s5 + $0x10] sm:$0xff]  ;;  %v927_v56 = vld [vmem:[%s2754_s3 + $0x40] sm:$0xff]  ;;  %p1933_p1 = pnand %p1932_p0, %p2089_p6  ;;  %p1940_p5 = por %p1939_p4, %p1938_p3 }
  0x34   : > { %1757 = vmatmul.mubr.msk.f32.gmra.mxu1 %vm1031_vm0, %v921_v29  ;;  %1008 = vperm.xlu1 %1854, %v946_v37   ;;  %v936_v57 = vld [vmem:[%s2756_s5 + $0x8] sm:$0xff]  ;;  %v935_v58 = vld [vmem:[%s2756_s5] sm:$0xff]  ;;  %v1911_v60 = vld [vmem:[%s2753_s2 + $0x10] sm:$0xff]  }
  0x35   : > { %530 = vmatpush1.bf16.msra.mxu0 %v1899_v27  ;;  %1162 = vmatprep.mubr.f32.mxu1 %v1993_v14  ;;  %v928_v59 = vld [vmem:[%s2754_s3 + $0x48] sm:$0xff]  ;;  %v929_v62 = vld [vmem:[%s2754_s3 + $0x50] sm:$0xff]  ;;  %v2263_v63 = vld [vmem:[%s2757_s6] sm:$0xff]  ;;  %p1934_p2 = pneg %p1933_p1 }
  0x36   : > { %531 = vmatprep.subr.bf16.mxu0 %v1900_v30  ;;  %v2253_v61 = vld [vmem:[%s2757_s6 + $0x8] sm:$0xff]  ;;  %v930_v0 = vld [vmem:[%s2754_s3 + $0x58] sm:$0xff]  ;;  %v931_v3 = vld [vmem:[%s2754_s3 + $0x60] sm:$0xff] }
  0x37   : > { %993 = vperm.xlu0 %1853, %v943_v43   ;;  %v1912_v2 = vld [vmem:[%s2753_s2 + $0x18] sm:$0xff]   ;;  %v2287_v4 = vld [vmem:[%s2757_s6 + $0x10] sm:$0xff]  ;;  %v932_v5 = vld [vmem:[%s2754_s3 + $0x68] sm:$0xff]  ;;  %p1941_p7 = pnand %p1940_p5, %p1934_p2 }
  0x38   : > { %1758 = vmatmul.mubr.msk.f32.gmra.mxu1 %vm1031_vm0, %v922_v34  ;;  %998 = vperm.xlu1 %1854, %v944_v42   ;;  %v933_v7 = vld [vmem:[%s2754_s3 + $0x70] sm:$0xff]  ;;  %v2308_v8 = vld [vmem:[%s2757_s6 + $0x18] sm:$0xff] }
  0x39   : > { %532 = vmatpush1.bf16.msra.mxu0 %v1902_v35  ;;  %1168 = vmatprep.mubr.f32.mxu1 %v1993_v14  ;;  %v934_v9 = vld [vmem:[%s2754_s3 + $0x78] sm:$0xff] }
  0x3a   : > { %533 = vmatprep.subr.bf16.mxu0 %v1903_v36 }
  0x3b   : > { %983 = vperm.xlu0 %1853, %v941_v48  }
  0x3c   : > { %1759 = vmatmul.mubr.msk.f32.gmra.mxu1 %vm1031_vm0, %v923_v40  ;;  %988 = vperm.xlu1 %1854, %v942_v47  }
  0x3d   : > { %534 = vmatpush1.bf16.msra.mxu0 %v1905_v39  ;;  %1174 = vmatprep.mubr.f32.mxu1 %v1993_v14 }
  0x3e   : > { %535 = vmatprep.subr.bf16.mxu0 %v1906_v41 }
  0x3f   : > { %973 = vperm.xlu0 %1853, %v939_v51  }
  0x40   : > { %1760 = vmatmul.mubr.msk.f32.gmra.mxu1 %vm1031_vm0, %v924_v45  ;;  %978 = vperm.xlu1 %1854, %v940_v50  }
  0x41   : > { %536 = vmatpush1.bf16.msra.mxu0 %v1908_v44  ;;  %1180 = vmatprep.mubr.f32.mxu1 %v1993_v14 }
  0x43   : > { %963 = vperm.xlu0 %1853, %v937_v55  }
  0x44   : > { %1751 = vmatmul.mubr.msk.bf16.vlgmr.msra.gmra.mxu0 %vm508_vm1, %v1909_v46  ;;  %1761 = vmatmul.mubr.msk.f32.gmra.mxu1 %vm1031_vm0, %v925_v49 }
  0x45   : > { %563 = vmatprep.mubr.bf16.mxu0 %v1994_v15  ;;  %1186 = vmatprep.mubr.f32.mxu1 %v1993_v14 }
  0x46   : > { %968 = vperm.xlu1 %1854, %v938_v54  }
  0x47   : > { %953 = vperm.xlu0 %1853, %v935_v58  }
  0x48   : > { %1762 = vmatmul.mubr.msk.f32.gmra.mxu1 %vm1031_vm0, %v926_v52 }
  0x49   : > { %1192 = vmatprep.mubr.f32.mxu1 %v1993_v14 }
  0x4a   : > { %958 = vperm.xlu1 %1854, %v936_v57  }
  0x4b   : > { %596 = vperm.xlu0 %1853, %v2263_v63  }
  0x4c   : > { %1752 = vmatmul.mubr.msk.bf16.gmra.mxu0 %vm508_vm1, %v1910_v53  ;;  %1763 = vmatmul.mubr.msk.f32.gmra.mxu1 %vm1031_vm0, %v927_v56 }
  0x4d   : > { %573 = vmatprep.mubr.bf16.mxu0 %v1994_v15  ;;  %1198 = vmatprep.mubr.f32.mxu1 %v1993_v14 }
  0x4e   : > { %601 = vperm.xlu1 %1854, %v2253_v61  }
  0x4f   : > { %1855 = vset.pattern.permute.xlu0 %v1995_v1 }
  0x50   : > { %1764 = vmatmul.mubr.msk.f32.gmra.mxu1 %vm1031_vm0, %v928_v59  ;;  %631 = vperm.xlu0 %1855, %v2263_v63  }
  0x51   : > { %1204 = vmatprep.mubr.f32.mxu1 %v1993_v14 }
  0x52   : > { %1856 = vset.pattern.permute.xlu1 %v1995_v1 }
  0x53   : > { %635 = vperm.xlu1 %1856, %v2253_v61  }
  0x54   : > { %1753 = vmatmul.mubr.msk.bf16.gmra.mxu0 %vm508_vm1, %v1911_v60  ;;  %1765 = vmatmul.mubr.msk.f32.gmra.mxu1 %vm1031_vm0, %v929_v62 }
  0x55   : > { %583 = vmatprep.mubr.bf16.mxu0 %v1994_v15  ;;  %1210 = vmatprep.mubr.f32.mxu1 %v1993_v14 }
  0x56   : > { %639 = vperm.xlu0 %1855, %v2287_v4  }
  0x57   : > { %1857 = vset.pattern.permute.xlu1 %v1994_v15 }
  0x58   : > { %1766 = vmatmul.mubr.msk.f32.gmra.mxu1 %vm1031_vm0, %v930_v0  ;;  %606 = vperm.xlu1 %1857, %v2287_v4  }
  0x59   : > { %1216 = vmatprep.mubr.f32.mxu1 %v1993_v14 }
  0x5a   : > { %1859 = vset.pattern.permute.xlu0 %v1996_v6 }
  0x5b   : > { %667 = vperm.xlu0 %1859, %v2253_v61  }
  0x5c   : > { %1754 = vmatmul.mubr.msk.bf16.gmra.mxu0 %vm508_vm1, %v1912_v2  ;;  %1767 = vmatmul.mubr.msk.f32.gmra.mxu1 %vm1031_vm0, %v931_v3 }
  0x5d   : > { %1222 = vmatprep.mubr.f32.mxu1 %v1993_v14  ;;  %1353 = vmatprep.mubr.bf16.mxu0 %v1994_v15 }
  0x5e   : > { %1858 = vset.pattern.permute.xlu1 %v1996_v6 }
  0x5f   : > { %663 = vperm.xlu1 %1858, %v2263_v63   ;;  %671 = vperm.xlu0 %1859, %v2287_v4  }
  0x60   : > { %1768 = vmatmul.mubr.msk.f32.gmra.mxu1 %vm1031_vm0, %v932_v5 }
  0x61   : > { %1228 = vmatprep.mubr.f32.mxu1 %v1993_v14 }
  0x63   : > { %1860 = vset.pattern.permute.xlu1 %v1994_v15  ;;  %1863 = vset.pattern.permute.xlu0 %v1997_v10 }
  0x64   : > { %1769 = vmatmul.mubr.msk.f32.gmra.mxu1 %vm1031_vm0, %v933_v7  ;;  %611 = vperm.xlu1 %1860, %v2308_v8  }
  0x65   : > { %1234 = vmatprep.mubr.f32.mxu1 %v1993_v14  ;;  %1298 = vperm.xlu0 %1863, %v2253_v61   ;;  %v2001_v14 = vmov 5  }
  0x68   : > { %1770 = vmatmul.mubr.msk.f32.gmra.mxu1 %vm1031_vm0, %v934_v9  ;;  %1861 = vset.pattern.permute.xlu1 %v1995_v1 }
  0x69   : > { %1363 = vmatprep.mubr.bf16.mxu1 %v1994_v15  ;;  %643 = vperm.xlu1 %1861, %v2308_v8   ;;  %v2002_v15 = vmov 8  }
  0x6a   : > { %1306 = vperm.xlu0 %1863, %v2308_v8  }
  0x6d   : > { %1862 = vset.pattern.permute.xlu1 %v1997_v10 }
  0x6e   : > { %1294 = vperm.xlu1 %1862, %v2263_v63   ;;  %1869 = vset.pattern.permute.xlu0 %v1998_v11 }
  0x6f   : > { %784 = vperm.xlu0 %1869, %v2253_v61  }
  0x72   : > { %1864 = vset.pattern.permute.xlu1 %v1996_v6 }
  0x73   : > { %675 = vperm.xlu1 %1864, %v2308_v8   ;;  %1870 = vset.pattern.permute.xlu0 %v1999_v12 }
  0x74   : > { %760 = vperm.xlu0 %1870, %v2253_v61  }
  0x77   : > { %1865 = vset.pattern.permute.xlu1 %v1997_v10 }
  0x78   : > { %1302 = vperm.xlu1 %1865, %v2287_v4   ;;  %764 = vperm.xlu0 %1870, %v2287_v4  }
  0x7c   : > { %1866 = vset.pattern.permute.xlu1 %v1999_v12  ;;  %768 = vperm.xlu0 %1870, %v2308_v8  }
  0x7d   : > { %756 = vperm.xlu1 %1866, %v2263_v63  }
  0x80   : > { %1874 = vset.pattern.permute.xlu0 %v2001_v14 }
  0x81   : > { %1867 = vset.pattern.permute.xlu1 %v2000_v13  ;;  %900 = vperm.xlu0 %1874, %v2253_v61  }
  0x82   : > { %872 = vperm.xlu1 %1867, %v2263_v63  }
  0x85   : > { %904 = vperm.xlu0 %1874, %v2287_v4  }
  0x86   : > { %876 = vperm.xlu1 %1867, %v2253_v61  }
  0x89   : > { %1879 = vset.pattern.permute.xlu0 %v2002_v15 }
  0x8a   : > { %1868 = vset.pattern.permute.xlu1 %v1998_v11  ;;  %1471 = vperm.xlu0 %1879, %v2253_v61  }
  0x8b   : > { %780 = vperm.xlu1 %1868, %v2263_v63  }
  0x8e   : > { %1882 = vset.pattern.permute.xlu0 %v2003_v16 }
  0x8f   : > { %1871 = vset.pattern.permute.xlu1 %v2000_v13  ;;  %1455 = vperm.xlu0 %1882, %v2308_v8  }
  0x90   : > { %880 = vperm.xlu1 %1871, %v2287_v4  }
  0x93   : > { %1884 = vset.pattern.permute.xlu0 %v2004_v33 }
  0x94   : > { %1872 = vset.pattern.permute.xlu1 %v2001_v14  ;;  %1575 = vperm.xlu0 %1884, %v2263_v63  }
  0x95   : > { %896 = vperm.xlu1 %1872, %v2263_v63  }
  0x98   : > { %1587 = vperm.xlu0 %1884, %v2308_v8  }
  0x99   : > { %1873 = vset.pattern.permute.xlu1 %v2003_v16 }
  0x9a   : > { %1443 = vperm.xlu1 %1873, %v2263_v63  }
  0x9e   : > { %1447 = vperm.xlu1 %1873, %v2253_v61  }
  0xa2   : > { %1875 = vset.pattern.permute.xlu1 %v1998_v11 }
  0xa3   : > { %788 = vperm.xlu1 %1875, %v2287_v4  }
  0xa6   : > { %v2349_v17 = vpop.permute.xlu0 %1023 }
  0xa7   : > { %1876 = vset.pattern.permute.xlu1 %v2000_v13  ;;  %v2352_v18 = vpop.permute.xlu1 %1013 }
  0xa8   : > { %884 = vperm.xlu1 %1876, %v2308_v8  }
  0xaa   : > { %v2355_v19 = vpop.permute.xlu0 %1028 }
  0xab   : > { %v2357_v20 = vpop.permute.xlu1 %1018 }
  0xac   : > { %1877 = vset.pattern.permute.xlu1 %v2003_v16 }
  0xad   : > { %1451 = vperm.xlu1 %1877, %v2287_v4  }
  0xae   : > { %v2359_v21 = vpop.permute.xlu0 %1003 }
  0xaf   : > { %v2361_v24 = vpop.permute.xlu1 %1008 }
  0xb1   : > { %1878 = vset.pattern.permute.xlu1 %v2002_v15 }
  0xb2   : > { %1467 = vperm.xlu1 %1878, %v2263_v63   ;;  %v2363_v25 = vpop.permute.xlu0 %993 }
  0xb3   : > { %v2365_v26 = vpop.permute.xlu1 %998 }
  0xb6   : > { %1880 = vset.pattern.permute.xlu1 %v1998_v11  ;;  %v2367_v27 = vpop.permute.xlu0 %983 }
  0xb7   : > { %792 = vperm.xlu1 %1880, %v2308_v8   ;;  %v2369_v28 = vpop.permute.xlu1 %988 }
  0xba   : > { %v2371_v29 = vpop.permute.xlu0 %973 }
  0xbb   : > { %1881 = vset.pattern.permute.xlu1 %v2001_v14  ;;  %v2373_v30 = vpop.permute.xlu1 %978 }
  0xbc   : > { %908 = vperm.xlu1 %1881, %v2308_v8  }
  0xbe   : > { %v964_v31 = vpop.permute.xlu0 %963 }
  0xc0   : > { %1883 = vset.pattern.permute.xlu1 %v2002_v15 }
  0xc1   : > { %1475 = vperm.xlu1 %1883, %v2287_v4   ;;  %v969_v32 = vpop.permute.xlu1 %968 }
  0xc2   : > { %v954_v34 = vpop.permute.xlu0 %953 }
  0xc5   : > { %1479 = vperm.xlu1 %1883, %v2308_v8   ;;  %v959_v37 = vpop.permute.xlu1 %958 }
  0xc9   : > { %1885 = vset.pattern.permute.xlu1 %v2004_v33 }
  0xca   : > { %1579 = vperm.xlu1 %1885, %v2253_v61  }
  0xce   : > { %1583 = vperm.xlu1 %1885, %v2287_v4  }
  0xec   : > { %v1146_v35 = vpop.f32.mrf.mxu1 }
  0xed   : > { %v1147_v38 = vadd.f32 %v1146_v35, %v954_v34 }
  0xee   : > { %v1148_v36 = vpop.f32.mrf.mxu1 }
  0xef   : > { %v1149_v40 = vadd.f32 %v1148_v36, %v954_v34  ;;  %v1241_v43 = vmax.f32 %v1147_v38, 0.0 }
  0xf0   : > { %v1152_v39 = vpop.f32.mrf.mxu1 }
  0xf1   : > { %v1153_v41 = vadd.f32 %v1152_v39, %v959_v37  ;;  %v1242_v47 = vmax.f32 %v1149_v40, 0.0 }
  0xf2   : > { %v1154_v42 = vpop.f32.mrf.mxu1 }
  0xf3   : > { %v1243_v44 = vmax.f32 %v1153_v41, 0.0  ;;  %v1155_v45 = vadd.f32 %v1154_v42, %v959_v37 }
  0xf4   : > { %v1158_v46 = vpop.f32.mrf.mxu1 }
  0xf5   : > { %v2379_v48 = vpack.c.bf16 %v1243_v44, %v1241_v43  ;;  %v1244_v49 = vmax.f32 %v1155_v45, 0.0  ;;  %v1159_v52 = vadd.f32 %v1158_v46, %v964_v31 }
  0xf6   : > { %v1160_v50 = vpop.f32.mrf.mxu1 }
  0xf7   : > { %v2381_v51 = vpack.c.bf16 %v1244_v49, %v1242_v47  ;;  %v1161_v54 = vadd.f32 %v1160_v50, %v964_v31  ;;  %v1245_v57 = vmax.f32 %v1159_v52, 0.0 }
  0xf8   : > { %v1164_v53 = vpop.f32.mrf.mxu1 }
  0xf9   : > { %v1165_v55 = vadd.f32 %v1164_v53, %v969_v32  ;;  %v1246_v62 = vmax.f32 %v1161_v54, 0.0 }
  0xfa   : > { %v1166_v56 = vpop.f32.mrf.mxu1 }
  0xfb   : > { %v1247_v58 = vmax.f32 %v1165_v55, 0.0  ;;  %v1167_v59 = vadd.f32 %v1166_v56, %v969_v32 }
  0xfc   : > { %v2383_v60 = vpop.f32.mrf.mxu1 }
  0xfd   : > { %v2385_v0 = vpack.c.bf16 %v1247_v58, %v1245_v57  ;;  %v1248_v1 = vmax.f32 %v1167_v59, 0.0 }
  0xfe   : > { %v2387_v2 = vpop.f32.mrf.mxu1 }
  0xff   : > { %v2389_v3 = vpack.c.bf16 %v1248_v1, %v1246_v62 }
 0x100   : > { %v2391_v5 = vpop.f32.mrf.mxu1 }
 0x102   : > { %v2393_v6 = vpop.f32.mrf.mxu1 }
 0x104   : > { %v2395_v7 = vpop.f32.mrf.mxu1 }
 0x106   : > { %v1184_v9 = vpop.f32.mrf.mxu1 }
 0x108   : > { %v2397_v10 = vpop.f32.mrf.mxu1 }
 0x10a   : > { %v1190_v11 = vpop.f32.mrf.mxu1 }
 0x10c   : > { %v1194_v12 = vpop.f32.mrf.mxu1 }
 0x10e   : > { %v1196_v13 = vpop.f32.mrf.mxu1 }
 0x110   : > { %v1200_v14 = vpop.f32.mrf.mxu1 }
 0x112   : > { %v1202_v15 = vpop.f32.mrf.mxu1 }
 0x114   : > { %v1206_v16 = vpop.f32.mrf.mxu1 }
 0x116   : > { %v1208_v31 = vpop.f32.mrf.mxu1 }
 0x118   : > { %v1212_v32 = vpop.f32.mrf.mxu1 }
 0x119   : > { %v1213_v62 = vadd.f32 %v1212_v32, %v2361_v24 }
 0x11a   : > { %v1214_v33 = vpop.f32.mrf.mxu1 }
 0x11b   : > { %v1215_v49 = vadd.f32 %v1214_v33, %v2361_v24  ;;  %v1201_v24 = vadd.f32 %v1200_v14, %v2365_v26  ;;  %v1263_v32 = vmax.f32 %v1213_v62, 0.0  ;;  %v597_v62 = vpop.permute.xlu0 %596 }
 0x11c   : > { %v1218_v34 = vpop.f32.mrf.mxu1 }
 0x11d   : > { %v1219_v56 = vadd.f32 %v1218_v34, %v2352_v18  ;;  %v1264_v33 = vmax.f32 %v1215_v49, 0.0 }
 0x11e   : > { %v1220_v35 = vpop.f32.mrf.mxu1 }
 0x11f   : > { %v1221_v45 = vadd.f32 %v1220_v35, %v2352_v18  ;;  %v1197_v18 = vadd.f32 %v1196_v13, %v2363_v25  ;;  %v1189_v13 = vadd.f32 %v2397_v10, %v2369_v28 }
 0x120   : > { %v1224_v36 = vpop.f32.mrf.mxu1 }
 0x121   : > { %v1225_v50 = vadd.f32 %v1224_v36, %v2357_v20  ;;  %v1266_v58 = vmax.f32 %v1221_v45, 0.0  ;;  %v1265_v36 = vmax.f32 %v1219_v56, 0.0  ;;  %v1255_v10 = vmax.f32 %v1189_v13, 0.0 }
 0x122   : > { %v1226_v37 = vpop.f32.mrf.mxu1 }
 0x123   : > { %v1227_v41 = vadd.f32 %v1226_v37, %v2357_v20  ;;  %v1267_v1 = vmax.f32 %v1225_v50, 0.0  ;;  %v1207_v20 = vadd.f32 %v1206_v16, %v2359_v21  ;;  %v1258_v16 = vmax.f32 %v1197_v18, 0.0 }
 0x124   : > { %v1230_v38 = vpop.f32.mrf.mxu1 }
 0x125   : > { %v1231_v42 = vadd.f32 %v1230_v38, %v2349_v17  ;;  %v1268_v52 = vmax.f32 %v1227_v41, 0.0  ;;  %v1289_v34 = vpack.c.bf16 %v1267_v1, %v1265_v36  ;;  %v1261_v41 = vmax.f32 %v1207_v20, 0.0 }
 0x126   : > { %v1232_v39 = vpop.f32.mrf.mxu1 }
 0x127   : > { %v1233_v43 = vadd.f32 %v1232_v39, %v2349_v17  ;;  %v1269_v57 = vmax.f32 %v1231_v42, 0.0  ;;  %v1209_v17 = vadd.f32 %v1208_v31, %v2359_v21  ;;  %v1290_v37 = vpack.c.bf16 %v1268_v52, %v1266_v58 }
 0x128   : > { %v1236_v40 = vpop.f32.mrf.mxu1  ;;  %v1185_v21 = vadd.f32 %v1184_v9, %v2367_v27  ;;  %v1259_v42 = vmax.f32 %v1201_v24, 0.0  ;;  %v1173_v9 = vadd.f32 %v2387_v2, %v2371_v29 }
 0x129   : > { %v1237_v46 = vadd.f32 %v1236_v40, %v2355_v19  ;;  %v1270_v53 = vmax.f32 %v1233_v43, 0.0  ;;  %v1262_v31 = vmax.f32 %v1209_v17, 0.0  ;;  %v1195_v40 = vadd.f32 %v1194_v12, %v2363_v25 }
 0x12a   : > { %v1238_v44 = vpop.f32.mrf.mxu1  ;;  %v1183_v25 = vadd.f32 %v2395_v7, %v2367_v27  ;;  %v1250_v7 = vmax.f32 %v1173_v9, 0.0 }
 0x12b   : > { %v1239_v47 = vadd.f32 %v1238_v44, %v2355_v19  ;;  %v1271_v54 = vmax.f32 %v1237_v46, 0.0  ;;  %v1203_v19 = vadd.f32 %v1202_v15, %v2365_v26  ;;  %v1191_v15 = vadd.f32 %v1190_v11, %v2369_v28 }
 0x12c   : > { %v1288_v39 = vpack.c.bf16 %v1264_v33, %v1262_v31  ;;  %v1287_v26 = vpack.c.bf16 %v1263_v32, %v1261_v41  ;;  %v1179_v11 = vadd.f32 %v2393_v6, %v2373_v30  ;;  %v1257_v12 = vmax.f32 %v1195_v40, 0.0 }
 0x12d   : > { %v1272_v55 = vmax.f32 %v1239_v47, 0.0  ;;  %v1291_v35 = vpack.c.bf16 %v1271_v54, %v1269_v57  ;;  %v1260_v38 = vmax.f32 %v1203_v19, 0.0  ;;  %v1256_v14 = vmax.f32 %v1191_v15, 0.0  ;;  %v602_v54 = vpop.permute.xlu1 %601 }
 0x12e   : > { %v1254_v44 = vmax.f32 %v1185_v21, 0.0  ;;  %v1177_v28 = vadd.f32 %v2391_v5, %v2373_v30  ;;  %v1285_v45 = vpack.c.bf16 %v1259_v42, %v1257_v12  ;;  %v1252_v6 = vmax.f32 %v1179_v11, 0.0 }
 0x12f   : > { %v1292_v59 = vpack.c.bf16 %v1272_v55, %v1270_v53  ;;  %v1286_v43 = vpack.c.bf16 %v1260_v38, %v1258_v16  ;;  %v1171_v47 = vadd.f32 %v2383_v60, %v2371_v29  ;;  %v1253_v27 = vmax.f32 %v1183_v25, 0.0  ;;  %v1913_v29 = vld [vmem:[%s2755_s4] sm:$0xff]   ;;  %v1914_v60 = vld [vmem:[%s2755_s4 + $0x8] sm:$0xff]  }
 0x130   : > { %v1284_v46 = vpack.c.bf16 %v1256_v14, %v1254_v44  ;;  %v1251_v2 = vmax.f32 %v1177_v28, 0.0  ;;  %v1282_v50 = vpack.c.bf16 %v1252_v6, %v1250_v7 }
 0x131   : > { %1321 = vmatprep.subr.bf16.mxu0 %v1292_v59  ;;  %1780 = vmatprep.subr.bf16.mxu1 %v1292_v59  ;;  %v1283_v49 = vpack.c.bf16 %v1255_v10, %v1253_v27  ;;  %v1249_v52 = vmax.f32 %v1171_v47, 0.0  ;;  %v636_v56 = vpop.permute.xlu1 %635  ;;  %v622_v59 = vlaneseq }
 0x132   : > { %1322 = vmatpush1.bf16.msra.mxu0 %v1291_v35  ;;  %1788 = vmatpush1.bf16.msra.mxu1 %v1291_v35  ;;  %v632_v35 = vpop.permute.xlu0 %631 }
 0x133   : > { %1323 = vmatprep.subr.bf16.mxu0 %v1290_v37  ;;  %1781 = vmatprep.subr.bf16.mxu1 %v1290_v37  ;;  %v1281_v30 = vpack.c.bf16 %v1251_v2, %v1249_v52  ;;  %v623_v1 = vshrl.u32 %v622_v59, 7 }
 0x135   : > { %v607_v17 = vpop.permute.xlu1 %606  ;;  %v624_v19 = vsub.s32 5, %v623_v1 }
 0x136   : > { %1324 = vmatpush1.bf16.msra.mxu0 %v1289_v34  ;;  %1789 = vmatpush1.bf16.msra.mxu1 %v1289_v34  ;;  %v640_v20 = vpop.permute.xlu0 %639 }
 0x137   : > { %1325 = vmatprep.subr.bf16.mxu0 %v1288_v39  ;;  %1782 = vmatprep.subr.bf16.mxu1 %v1288_v39  ;;  %v625_v37 = vrot.slane %v2131_v23, %v624_v19  ;;  %v629_v36 = vrot.slane %v2129_v22, %v624_v19 }
 0x139   : > { %v648_v31 = vmul.f32 %v636_v56, %v625_v37  ;;  %v646_v34 = vmul.f32 %v632_v35, %v625_v37  ;;  %v649_v38 = vmul.f32 %v636_v56, %v629_v36  ;;  %v647_v40 = vmul.f32 %v632_v35, %v629_v36 }
 0x13a   : > { %1326 = vmatpush1.bf16.msra.mxu0 %v1287_v26  ;;  %1790 = vmatpush1.bf16.msra.mxu1 %v1287_v26  ;;  %v668_v15 = vpop.permute.xlu0 %667  ;;  %v650_v26 = vmul.f32 %v640_v20, %v625_v37  ;;  %v651_v14 = vmul.f32 %v640_v20, %v629_v36 }
 0x13b   : > { %1327 = vmatprep.subr.bf16.mxu0 %v1286_v43  ;;  %1783 = vmatprep.subr.bf16.mxu1 %v1286_v43 }
 0x13e   : > { %1328 = vmatpush1.bf16.msra.mxu0 %v1285_v45  ;;  %1791 = vmatpush1.bf16.msra.mxu1 %v1285_v45  ;;  %v672_v9 = vpop.permute.xlu0 %671 }
 0x13f   : > { %1329 = vmatprep.subr.bf16.mxu0 %v1284_v46  ;;  %1784 = vmatprep.subr.bf16.mxu1 %v1284_v46 }
 0x142   : > { %1330 = vmatpush1.bf16.msra.mxu0 %v1283_v49  ;;  %1792 = vmatpush1.bf16.msra.mxu1 %v1283_v49 }
 0x143   : > { %1331 = vmatprep.subr.bf16.mxu0 %v1282_v50  ;;  %1785 = vmatprep.subr.bf16.mxu1 %v1282_v50 }
 0x146   : > { %1332 = vmatpush1.bf16.msra.mxu0 %v1281_v30  ;;  %1793 = vmatpush1.bf16.msra.mxu1 %v1281_v30 }
 0x147   : > { %1333 = vmatprep.subr.bf16.mxu0 %v2389_v3  ;;  %1786 = vmatprep.subr.bf16.mxu1 %v2389_v3  ;;  %v2005_v3 = vmov 10  }
 0x148   : > { %1886 = vset.pattern.permute.xlu1 %v2005_v3  ;;  %1887 = vset.pattern.permute.xlu0 %v2005_v3 }
 0x149   : > { %1599 = vperm.xlu1 %1886, %v2263_v63   ;;  %1603 = vperm.xlu0 %1887, %v2253_v61   ;;  %v664_v61 = vpop.permute.xlu1 %663 }
 0x14a   : > { %1334 = vmatpush1.bf16.msra.mxu0 %v2385_v0  ;;  %1794 = vmatpush1.bf16.msra.mxu1 %v2385_v0 }
 0x14b   : > { %1335 = vmatprep.subr.bf16.mxu0 %v2381_v51  ;;  %1787 = vmatprep.subr.bf16.mxu1 %v2381_v51  ;;  %v555_v51 = vpop.f32.mrf.mxu0 }
 0x14c   : > { %v614_v24 = vadd.f32 %v597_v62, %v555_v51 }
 0x14d   : > { %1607 = vperm.xlu1 %1886, %v2287_v4   ;;  %v557_v0 = vpop.f32.mrf.mxu0 }
 0x14e   : > { %1336 = vmatpush1.bf16.msra.mxu0 %v2379_v48  ;;  %1795 = vmatpush1.bf16.msra.mxu1 %v2379_v48  ;;  %v615_v39 = vadd.f32 %v597_v62, %v557_v0  ;;  %v2451_v42 = vadd.f32 %v646_v34, %v614_v24 }
 0x14f   : > { %v559_v5 = vpop.f32.mrf.mxu0 }
 0x150   : > { %v616_v32 = vadd.f32 %v602_v54, %v559_v5  ;;  %v2453_v11 = vadd.f32 %v647_v40, %v615_v39 }
 0x151   : > { %1354 = vmatmul.mubr.bf16.vlgmr.msra.gmra.mxu0 %v1913_v29  ;;  %1364 = vmatmul.mubr.bf16.vlgmr.msra.gmra.mxu1 %v1914_v60  ;;  %v561_v53 = vpop.f32.mrf.mxu0 }
 0x152   : > { %1611 = vperm.xlu1 %1886, %v2308_v8   ;;  %v612_v8 = vpop.permute.xlu1 %611  ;;  %v617_v41 = vadd.f32 %v602_v54, %v561_v53  ;;  %v2449_v13 = vadd.f32 %v648_v31, %v616_v32 }
 0x153   : > { %v565_v55 = vpop.f32.mrf.mxu0 }
 0x154   : > { %v618_v23 = vadd.f32 %v607_v17, %v565_v55  ;;  %v2455_v22 = vadd.f32 %v649_v38, %v617_v41  ;;  %v686_v10 = vadd.f32 %v2449_v13, %v2451_v42 }
 0x155   : > { %v567_v48 = vpop.f32.mrf.mxu0 }
 0x156   : > { %v644_v21 = vpop.permute.xlu1 %643  ;;  %v619_v43 = vadd.f32 %v607_v17, %v567_v48  ;;  %v2465_v45 = vadd.f32 %v650_v26, %v618_v23  ;;  %v695_v47 = vadd.f32 %v2455_v22, %v2453_v11 }
 0x157   : > { %v569_v57 = vpop.f32.mrf.mxu0  ;;  %v652_v6 = vmul.f32 %v644_v21, %v625_v37  ;;  %v653_v7 = vmul.f32 %v644_v21, %v629_v36 }
 0x158   : > { %v620_v46 = vadd.f32 %v612_v8, %v569_v57  ;;  %v2469_v27 = vadd.f32 %v651_v14, %v619_v43  ;;  %v687_v30 = vadd.f32 %v686_v10, %v2465_v45 }
 0x159   : > { %v571_v58 = vpop.f32.mrf.mxu0 }
 0x15a   : > { %v2461_v44 = vpop.permute.xlu1 %1294  ;;  %v621_v2 = vadd.f32 %v612_v8, %v571_v58  ;;  %v2474_v29 = vadd.f32 %v652_v6, %v620_v46  ;;  %v696_v51 = vadd.f32 %v695_v47, %v2469_v27 }
 0x15b   : > { %v575_v63 = vpop.f32.mrf.mxu0 }
 0x15c   : > { %v2457_v25 = vadd.f32 %v664_v61, %v575_v63  ;;  %v2481_v0 = vadd.f32 %v653_v7, %v621_v2  ;;  %v688_v55 = vadd.f32 %v687_v30, %v2474_v29 }
 0x15d   : > { %v577_v4 = vpop.f32.mrf.mxu0 }
 0x15e   : > { %v2476_v60 = vadd.f32 %v664_v61, %v577_v4  ;;  %v676_v5 = vpop.permute.xlu1 %675  ;;  %v697_v57 = vadd.f32 %v696_v51, %v2481_v0  ;;  %v689_v59 = vrot.slane %v688_v55, 4 }
 0x15f   : > { %v579_v33 = vpop.f32.mrf.mxu0 }
 0x160   : > { %v2459_v12 = vadd.f32 %v668_v15, %v579_v33  ;;  %v698_v1 = vrot.slane %v697_v57, 4  ;;  %v690_v35 = vadd.f32 %v689_v59, %v688_v55 }
 0x161   : > { %v581_v18 = vpop.f32.mrf.mxu0 }
 0x162   : > { %v803_v49 = vadd.f32 %v2459_v12, %v2457_v25  ;;  %v2478_v3 = vadd.f32 %v668_v15, %v581_v18  ;;  %v699_v19 = vadd.f32 %v698_v1, %v697_v57  ;;  %v691_v33 = vrot.slane %v690_v35, 2 }
 0x163   : > { %v585_v16 = vpop.f32.mrf.mxu0 }
 0x164   : > { %v682_v50 = vadd.f32 %v672_v9, %v585_v16  ;;  %v812_v48 = vadd.f32 %v2478_v3, %v2476_v60  ;;  %v700_v20 = vrot.slane %v699_v19, 2  ;;  %v692_v18 = vadd.f32 %v691_v33, %v690_v35  ;;  %v2496_v16 = vpop.permute.xlu1 %1302 }
 0x165   : > { %v587_v28 = vpop.f32.mrf.mxu0 }
 0x166   : > { %v804_v53 = vadd.f32 %v803_v49, %v682_v50  ;;  %v2488_v56 = vadd.f32 %v672_v9, %v587_v28  ;;  %v701_v24 = vadd.f32 %v700_v20, %v699_v19  ;;  %v693_v34 = vrot.slane %v692_v18, 1 }
 0x167   : > { %v589_v52 = vpop.f32.mrf.mxu0 }
 0x168   : > { %v2483_v54 = vadd.f32 %v676_v5, %v589_v52  ;;  %v813_v62 = vadd.f32 %v812_v48, %v2488_v56  ;;  %v702_v38 = vrot.slane %v701_v24, 1  ;;  %v694_v40 = vadd.f32 %v693_v34, %v692_v18  ;;  %v2498_v28 = vpop.permute.xlu1 %756  ;;  %v1299_v18 = vpop.permute.xlu0 %1298 }
 0x169   : > { %v591_v17 = vpop.f32.mrf.mxu0 }
 0x16a   : > { %v805_v58 = vadd.f32 %v804_v53, %v2483_v54  ;;  %v2493_v63 = vadd.f32 %v676_v5, %v591_v17  ;;  %v703_v21 = vadd.f32 %v702_v38, %v701_v24  ;;  %v705_v26 = vmul.f32 0.03125, %v694_v40 }
 0x16c   : > { %v806_v61 = vrot.slane %v805_v58, 4  ;;  %v814_v4 = vadd.f32 %v813_v62, %v2493_v63  ;;  %v706_v43 = vmul.f32 0.03125, %v703_v21  ;;  %v2501_v10 = vsub.f32 %v2451_v42, %v705_v26 }
 0x16d   : > { %v2504_v6 = vsub.f32 %v2449_v13, %v705_v26  ;;  %v2519_v52 = vsub.f32 %v2465_v45, %v705_v26  ;;  %v2534_v45 = vpop.permute.xlu1 %872  ;;  %v2541_v53 = vsub.f32 %v2474_v29, %v705_v26 }
 0x16e   : > { %v807_v8 = vadd.f32 %v806_v61, %v805_v58  ;;  %v815_v37 = vrot.slane %v814_v4, 4  ;;  %v2507_v47 = vsub.f32 %v2453_v11, %v706_v43  ;;  %v2510_v7 = vsub.f32 %v2455_v22, %v706_v43 }
 0x16f   : > { %v715_v13 = vmul.f32 %v2501_v10, %v2501_v10  ;;  %v717_v42 = vmul.f32 %v2504_v6, %v2504_v6  ;;  %v2526_v30 = vsub.f32 %v2469_v27, %v706_v43  ;;  %v719_v27 = vmul.f32 %v2519_v52, %v2519_v52 }
 0x170   : > { %v808_v36 = vrot.slane %v807_v8, 2  ;;  %v816_v31 = vadd.f32 %v815_v37, %v814_v4  ;;  %v716_v22 = vmul.f32 %v2507_v47, %v2507_v47  ;;  %v2552_v57 = vsub.f32 %v2481_v0, %v706_v43 }
 0x171   : > { %v723_v55 = vadd.f32 %v717_v42, %v715_v13  ;;  %v720_v17 = vmul.f32 %v2526_v30, %v2526_v30  ;;  %v2570_v35 = vpop.permute.xlu1 %876 }
 0x172   : > { %v809_v32 = vadd.f32 %v808_v36, %v807_v8  ;;  %v817_v15 = vrot.slane %v816_v31, 2 }
 0x173   : > { %v724_v1 = vadd.f32 %v723_v55, %v719_v27 }
 0x174   : > { %v810_v39 = vrot.slane %v809_v32, 1  ;;  %v818_v41 = vadd.f32 %v817_v15, %v816_v31 }
 0x175   : > { %v2581_v34 = vpop.permute.xlu1 %780 }
 0x176   : > { %v811_v23 = vadd.f32 %v810_v39, %v809_v32  ;;  %v819_v14 = vrot.slane %v818_v41, 1 }
 0x178   : > { %v821_v9 = vmul.f32 0.03125, %v811_v23  ;;  %v820_v46 = vadd.f32 %v819_v14, %v818_v41 }
 0x17a   : > { %v2513_v2 = vsub.f32 %v2459_v12, %v821_v9  ;;  %v2516_v49 = vsub.f32 %v2457_v25, %v821_v9  ;;  %v822_v11 = vmul.f32 0.03125, %v820_v46  ;;  %v718_v25 = vmul.f32 %v2510_v7, %v2510_v7  ;;  %v1307_v46 = vpop.permute.xlu0 %1306 }
 0x17b   : > { %v2532_v12 = vsub.f32 %v682_v50, %v821_v9  ;;  %v2557_v29 = vsub.f32 %v2483_v54, %v821_v9  ;;  %v722_v54 = vmul.f32 %v2552_v57, %v2552_v57 }
 0x17c   : > { %v831_v51 = vmul.f32 %v2516_v49, %v2516_v49  ;;  %v833_v5 = vmul.f32 %v2513_v2, %v2513_v2  ;;  %v2546_v48 = vsub.f32 %v2478_v3, %v822_v11  ;;  %v2549_v50 = vsub.f32 %v2476_v60, %v822_v11 }
 0x17d   : > { %v732_v58 = vadd.f32 %v718_v25, %v716_v22  ;;  %v835_v59 = vmul.f32 %v2532_v12, %v2532_v12  ;;  %v721_v3 = vmul.f32 %v2541_v53, %v2541_v53  ;;  %v2564_v60 = vsub.f32 %v2488_v56, %v822_v11 }
 0x17e   : > { %v839_v62 = vadd.f32 %v833_v5, %v831_v51  ;;  %v832_v0 = vmul.f32 %v2549_v50, %v2549_v50  ;;  %v834_v61 = vmul.f32 %v2546_v48, %v2546_v48  ;;  %v837_v19 = vmul.f32 %v2557_v29, %v2557_v29  ;;  %v2588_v5 = vpop.permute.xlu1 %880 }
 0x17f   : > { %v733_v4 = vadd.f32 %v732_v58, %v720_v17  ;;  %v725_v33 = vadd.f32 %v724_v1, %v721_v3  ;;  %v2577_v56 = vsub.f32 %v2493_v63, %v822_v11  ;;  %v836_v37 = vmul.f32 %v2564_v60, %v2564_v60 }
 0x180   : > { %v840_v8 = vadd.f32 %v839_v62, %v835_v59  ;;  %v848_v20 = vadd.f32 %v834_v61, %v832_v0 }
 0x181   : > { %v734_v24 = vadd.f32 %v733_v4, %v722_v54  ;;  %v726_v39 = vrot.slane %v725_v33, 4  ;;  %v838_v40 = vmul.f32 %v2577_v56, %v2577_v56 }
 0x182   : > { %v841_v32 = vadd.f32 %v840_v8, %v837_v19  ;;  %v849_v41 = vadd.f32 %v848_v20, %v836_v37 }
 0x183   : > { %v735_v14 = vrot.slane %v734_v24, 4  ;;  %v727_v25 = vadd.f32 %v726_v39, %v725_v33  ;;  %v2591_v33 = vpop.permute.xlu1 %896 }
 0x184   : > { %v842_v43 = vrot.slane %v841_v32, 4  ;;  %v850_v51 = vadd.f32 %v849_v41, %v838_v40 }
 0x185   : > { %v736_v3 = vadd.f32 %v735_v14, %v734_v24  ;;  %v728_v54 = vrot.slane %v727_v25, 2 }
 0x186   : > { %v843_v62 = vadd.f32 %v842_v43, %v841_v32 }
 0x187   : > { %v737_v37 = vrot.slane %v736_v3, 2  ;;  %v2593_v41 = vpop.permute.xlu1 %1443 }
 0x188   : > { %v844_v8 = vrot.slane %v843_v62, 2 }
 0x189   : > { %v738_v32 = vadd.f32 %v737_v37, %v736_v3 }
 0x211   : > { %v1355_v36 = vpop.f32.mrf.mxu0  ;;  %v1365_v31 = vpop.f32.mrf.mxu1 }
 0x212   : > { %v1356_v21 = vadd.f32 %v1355_v36, %v2461_v44  ;;  %v1366_v11 = vadd.f32 %v1365_v31, %v2496_v16  ;;  %v729_v31 = vadd.f32 %v728_v54, %v727_v25 }
 0x213   : > { %v1357_v15 = vpop.f32.mrf.mxu0  ;;  %v1367_v38 = vpop.f32.mrf.mxu1 }
 0x214   : > { %v1358_v13 = vadd.f32 %v1357_v15, %v2461_v44  ;;  %v1368_v58 = vadd.f32 %v1367_v38, %v2496_v16  ;;  %v851_v44 = vrot.slane %v850_v51, 4  ;;  %v845_v38 = vadd.f32 %v844_v8, %v843_v62 }
 0x215   : > { %v1359_v63 = vpop.f32.mrf.mxu0  ;;  %v1369_v26 = vpop.f32.mrf.mxu1 }
 0x216   : > { %v1360_v23 = vadd.f32 %v1359_v63, %v1299_v18  ;;  %v1370_v59 = vadd.f32 %v1369_v26, %v1307_v46  ;;  %v730_v63 = vrot.slane %v729_v31, 1  ;;  %v846_v43 = vrot.slane %v845_v38, 1 }
 0x217   : > { %v1361_v9 = vpop.f32.mrf.mxu0  ;;  %v1371_v27 = vpop.f32.mrf.mxu1 }
 0x218   : > { %v1374_v42 = vadd.f32 %v1360_v23, %v1356_v21  ;;  %v1362_v22 = vadd.f32 %v1361_v9, %v1299_v18  ;;  %v1372_v61 = vadd.f32 %v1371_v27, %v1307_v46  ;;  %v852_v18 = vadd.f32 %v851_v44, %v850_v51 }
 0x219   : > { %v739_v9 = vrot.slane %v738_v32, 1 }
 0x21a   : > { %v1375_v55 = vadd.f32 %v1374_v42, %v1366_v11  ;;  %v1383_v17 = vadd.f32 %v1362_v22, %v1358_v13  ;;  %v853_v40 = vrot.slane %v852_v18, 2 }
 0x21b   : > { %v740_v62 = vadd.f32 %v739_v9, %v738_v32 }
 0x21c   : > { %v1384_v1 = vadd.f32 %v1383_v17, %v1368_v58  ;;  %v1376_v0 = vadd.f32 %v1375_v55, %v1370_v59  ;;  %v854_v27 = vadd.f32 %v853_v40, %v852_v18  ;;  %v731_v55 = vadd.f32 %v730_v63, %v729_v31 }
 0x21d   : > { %v847_v17 = vadd.f32 %v846_v43, %v845_v38  ;;  %v742_v31 = vmul.f32 0.03125, %v740_v62 }
 0x21e   : > { %v1377_v4 = vrot.slane %v1376_v0, 4  ;;  %v1385_v19 = vadd.f32 %v1384_v1, %v1372_v61  ;;  %v2595_v1 = vpop.permute.xlu1 %1447  ;;  %v855_v54 = vrot.slane %v854_v27, 1  ;;  %v741_v8 = vmul.f32 0.03125, %v731_v55 }
 0x21f   : > { %v857_v18 = vmul.f32 0.03125, %v847_v17 }
 0x220   : > { %v1378_v20 = vadd.f32 %v1377_v4, %v1376_v0  ;;  %v1386_v36 = vrot.slane %v1385_v19, 4  ;;  %v2603_v4 = vpop.permute.xlu0 %784 }
 0x221   : > { %v859_v40 = vadd.f32 1e-12, %v857_v18 }
 0x222   : > { %v1379_v15 = vrot.slane %v1378_v20, 2  ;;  %v1387_v16 = vadd.f32 %v1386_v36, %v1385_v19  ;;  %v2619_v38 = vpop.permute.xlu1 %788 }
 0x224   : > { %v1380_v24 = vadd.f32 %v1379_v15, %v1378_v20  ;;  %v1388_v39 = vrot.slane %v1387_v16, 2  ;;  %v2629_v63 = vpop.permute.xlu0 %760 }
 0x226   : > { %v1381_v26 = vrot.slane %v1380_v24, 1  ;;  %v1389_v14 = vadd.f32 %v1388_v39, %v1387_v16  ;;  %v2635_v55 = vpop.permute.xlu1 %884 }
 0x228   : > { %v1382_v46 = vadd.f32 %v1381_v26, %v1380_v24  ;;  %v1390_v42 = vrot.slane %v1389_v14, 1  ;;  %v765_v62 = vpop.permute.xlu0 %764 }
 0x22a   : > { %v1392_v51 = vmul.f32 0.03125, %v1382_v46  ;;  %v1391_v25 = vadd.f32 %v1390_v42, %v1389_v14 }
 0x22c   : > { %v2597_v3 = vsub.f32 %v1356_v21, %v1392_v51  ;;  %v2599_v0 = vsub.f32 %v1360_v23, %v1392_v51  ;;  %v2601_v44 = vsub.f32 %v1366_v11, %v1392_v51  ;;  %v1393_v19 = vmul.f32 0.03125, %v1391_v25 }
 0x22d   : > { %v2605_v37 = vsub.f32 %v1370_v59, %v1392_v51  ;;  %v856_v59 = vadd.f32 %v855_v54, %v854_v27 }
 0x22e   : > { %v1402_v20 = vmul.f32 %v2597_v3, %v2597_v3  ;;  %v1404_v36 = vmul.f32 %v2599_v0, %v2599_v0  ;;  %v2611_v21 = vsub.f32 %v1358_v13, %v1393_v19  ;;  %v2613_v23 = vsub.f32 %v1362_v22, %v1393_v19 }
 0x22f   : > { %v2615_v11 = vsub.f32 %v1368_v58, %v1393_v19  ;;  %v1406_v15 = vmul.f32 %v2601_v44, %v2601_v44  ;;  %v2621_v32 = vsub.f32 %v1372_v61, %v1393_v19  ;;  %v743_v22 = vadd.f32 1e-12, %v741_v8 }
 0x230   : > { %v1410_v16 = vadd.f32 %v1404_v36, %v1402_v20  ;;  %v1403_v24 = vmul.f32 %v2611_v21, %v2611_v21  ;;  %v1405_v13 = vmul.f32 %v2613_v23, %v2613_v23  ;;  %v1408_v58 = vmul.f32 %v2605_v37, %v2605_v37  ;;  %v2637_v36 = vpop.permute.xlu1 %1451 }
 0x231   : > { %v1407_v26 = vmul.f32 %v2615_v11, %v2615_v11  ;;  %v744_v61 = vadd.f32 1e-12, %v742_v31  ;;  %v858_v9 = vmul.f32 0.03125, %v856_v59  ;;  %v1409_v46 = vmul.f32 %v2621_v32, %v2621_v32 }
 0x232   : > { %v1411_v39 = vadd.f32 %v1410_v16, %v1406_v15  ;;  %v1419_v14 = vadd.f32 %v1405_v13, %v1403_v24  ;;  %1915 = vrsqrt.f32 %v743_v22  ;;  %v769_v15 = vpop.permute.xlu0 %768 }
 0x233   : > { %1917 = vrsqrt.f32 %v859_v40  ;;  %v860_v17 = vadd.f32 1e-12, %v858_v9 }
 0x234   : > { %v1412_v43 = vadd.f32 %v1411_v39, %v1408_v58  ;;  %v1420_v42 = vadd.f32 %v1419_v14, %v1407_v26  ;;  %1919 = vrsqrt.f32 %v744_v61  ;;  %v2639_v58 = vpop.permute.xlu1 %1467 }
 0x235   : > { %1921 = vrsqrt.f32 %v860_v17 }
 0x236   : > { %v1413_v27 = vrot.slane %v1412_v43, 4  ;;  %v1421_v51 = vadd.f32 %v1420_v42, %v1409_v46  ;;  %v2641_v39 = vpop.permute.xlu0 %900 }
 0x238   : > { %v1414_v25 = vadd.f32 %v1413_v27, %v1412_v43  ;;  %v1422_v54 = vrot.slane %v1421_v51, 4 }
 0x23a   : > { %v1415_v19 = vrot.slane %v1414_v25, 2  ;;  %v1423_v8 = vadd.f32 %v1422_v54, %v1421_v51 }
 0x23c   : > { %v1416_v20 = vadd.f32 %v1415_v19, %v1414_v25  ;;  %v1424_v18 = vrot.slane %v1423_v8, 2  ;;  %v2650_v19 = vpop.permute.xlu1 %792 }
 0x23e   : > { %v1417_v31 = vrot.slane %v1416_v20, 1  ;;  %v1425_v16 = vadd.f32 %v1424_v18, %v1423_v8  ;;  %v905_v8 = vpop.permute.xlu0 %904 }
 0x23f   : > { %v1916_v22 = vpop.eup %1915 }
 0x240   : > { %v1418_v59 = vadd.f32 %v1417_v31, %v1416_v20  ;;  %v1426_v24 = vrot.slane %v1425_v16, 1  ;;  %v1918_v26 = vpop.eup %1917  ;;  %v747_v27 = vmul.f32 %v1916_v22, %v2501_v10  ;;  %v749_v25 = vmul.f32 %v1916_v22, %v2504_v6 }
 0x241   : > { %v1920_v61 = vpop.eup %1919  ;;  %v863_v9 = vmul.f32 %v1918_v26, %v2516_v49  ;;  %v865_v46 = vmul.f32 %v1918_v26, %v2513_v2  ;;  %v751_v17 = vmul.f32 %v1916_v22, %v2519_v52  ;;  %v867_v54 = vmul.f32 %v1918_v26, %v2532_v12 }
 0x242   : > { %v1428_v13 = vmul.f32 0.03125, %v1418_v59  ;;  %v1427_v40 = vadd.f32 %v1426_v24, %v1425_v16  ;;  %v748_v51 = vmul.f32 %v1920_v61, %v2507_v47  ;;  %v1922_v20 = vpop.eup %1921  ;;  %v750_v49 = vmul.f32 %v1920_v61, %v2510_v7  ;;  %v909_v24 = vpop.permute.xlu1 %908 }
 0x243   : > { %v752_v2 = vmul.f32 %v1920_v61, %v2526_v30  ;;  %v753_v18 = vmul.f32 %v1916_v22, %v2541_v53  ;;  %v887_v10 = vmul.f32 %v2534_v45, %v863_v9  ;;  %v889_v47 = vmul.f32 %v2570_v35, %v865_v46 }
 0x244   : > { %v1430_v14 = vadd.f32 1e-12, %v1428_v13  ;;  %v1429_v43 = vmul.f32 0.03125, %v1427_v40  ;;  %v869_v6 = vmul.f32 %v1918_v26, %v2557_v29  ;;  %v771_v52 = vmul.f32 %v2498_v28, %v747_v27  ;;  %v1472_v13 = vpop.permute.xlu0 %1471 }
 0x245   : > { %v772_v12 = vmul.f32 %v2498_v28, %v748_v51  ;;  %v773_v31 = vmul.f32 %v2629_v63, %v749_v25  ;;  %v775_v16 = vmul.f32 %v765_v62, %v751_v17  ;;  %v864_v59 = vmul.f32 %v1922_v20, %v2549_v50 }
 0x246   : > { %1923 = vrsqrt.f32 %v1430_v14  ;;  %v1431_v42 = vadd.f32 1e-12, %v1429_v43  ;;  %v866_v7 = vmul.f32 %v1922_v20, %v2546_v48  ;;  %v868_v30 = vmul.f32 %v1922_v20, %v2564_v60 }
 0x247   : > { %v891_v53 = vmul.f32 %v2588_v5, %v867_v54  ;;  %v774_v22 = vmul.f32 %v2629_v63, %v750_v49  ;;  %v776_v29 = vmul.f32 %v765_v62, %v752_v2  ;;  %v754_v40 = vmul.f32 %v1920_v61, %v2552_v57 }
 0x248   : > { %1925 = vrsqrt.f32 %v1431_v42  ;;  %v777_v26 = vmul.f32 %v769_v15, %v753_v18  ;;  %v911_v28 = vadd.f32 %v2591_v33, %v887_v10  ;;  %v870_v14 = vmul.f32 %v1922_v20, %v2577_v56  ;;  %v1476_v56 = vpop.permute.xlu1 %1475 }
 0x249   : > { %v893_v50 = vmul.f32 %v2635_v55, %v869_v6  ;;  %v913_v48 = vadd.f32 %v2641_v39, %v889_v47  ;;  %v795_v60 = vadd.f32 %v2581_v34, %v771_v52  ;;  %v796_v43 = vadd.f32 %v2581_v34, %v772_v12 }
 0x24a   : > { %v797_v9 = vadd.f32 %v2603_v4, %v773_v31  ;;  %v799_v63 = vadd.f32 %v2619_v38, %v775_v16  ;;  %v888_v62 = vmul.f32 %v2534_v45, %v864_v59  ;;  %v890_v57 = vmul.f32 %v2570_v35, %v866_v7  ;;  %v1456_v45 = vpop.permute.xlu0 %1455 }
 0x24b   : > { %v892_v61 = vmul.f32 %v2588_v5, %v868_v30  ;;  %v915_v46 = vadd.f32 %v905_v8, %v891_v53  ;;  %v798_v42 = vadd.f32 %v2603_v4, %v774_v22  ;;  %v800_v27 = vadd.f32 %v2619_v38, %v776_v29 }
 0x24c   : > { %v778_v51 = vmul.f32 %v769_v15, %v754_v40  ;;  %v801_v25 = vadd.f32 %v2650_v19, %v777_v26  ;;  %v1490_v17 = vadd.f32 %v911_v28, %v795_v60  ;;  %v894_v54 = vmul.f32 %v2635_v55, %v870_v14  ;;  %v1480_v12 = vpop.permute.xlu1 %1479 }
 0x24d   : > { %v1492_v20 = vadd.f32 %v913_v48, %v797_v9  ;;  %v917_v49 = vadd.f32 %v909_v24, %v893_v50  ;;  %v912_v38 = vadd.f32 %v2591_v33, %v888_v62  ;;  %v914_v15 = vadd.f32 %v2641_v39, %v890_v57 }
 0x24e   : > { %v916_v18 = vadd.f32 %v905_v8, %v892_v61  ;;  %v1494_v10 = vadd.f32 %v915_v46, %v799_v63  ;;  %v918_v39 = vadd.f32 %v909_v24, %v894_v54  ;;  %v802_v26 = vadd.f32 %v2650_v19, %v778_v51 }
 0x24f   : > { %v1496_v28 = vadd.f32 %v917_v49, %v801_v25 }
 0x253   : > { %v1924_v34 = vpop.eup %1923 }
 0x254   : > { %v1434_v35 = vmul.f32 %v1924_v34, %v2597_v3  ;;  %v1436_v5 = vmul.f32 %v1924_v34, %v2599_v0  ;;  %v1438_v2 = vmul.f32 %v1924_v34, %v2601_v44  ;;  %v1440_v4 = vmul.f32 %v1924_v34, %v2605_v37 }
 0x255   : > { %v1926_v47 = vpop.eup %1925 }
 0x256   : > { %v1458_v55 = vmul.f32 %v2593_v41, %v1434_v35  ;;  %v1460_v6 = vmul.f32 %v2595_v1, %v1436_v5  ;;  %v1462_v52 = vmul.f32 %v2637_v36, %v1438_v2  ;;  %v1464_v3 = vmul.f32 %v1456_v45, %v1440_v4 }
 0x257   : > { %v1435_v0 = vmul.f32 %v1926_v47, %v2611_v21  ;;  %v1437_v44 = vmul.f32 %v1926_v47, %v2613_v23  ;;  %v1439_v37 = vmul.f32 %v1926_v47, %v2615_v11  ;;  %v1441_v33 = vmul.f32 %v1926_v47, %v2621_v32 }
 0x258   : > { %v1482_v8 = vadd.f32 %v2639_v58, %v1458_v55  ;;  %v1484_v31 = vadd.f32 %v1472_v13, %v1460_v6  ;;  %v1486_v16 = vadd.f32 %v1476_v56, %v1462_v52  ;;  %v1491_v21 = vadd.f32 %v912_v38, %v796_v43 }
 0x259   : > { %v1459_v59 = vmul.f32 %v2593_v41, %v1435_v0  ;;  %v1461_v7 = vmul.f32 %v2595_v1, %v1437_v44  ;;  %v1463_v30 = vmul.f32 %v2637_v36, %v1439_v37  ;;  %v1465_v53 = vmul.f32 %v1456_v45, %v1441_v33 }
 0x25a   : > { %v1498_v22 = vadd.f32 %v1490_v17, %v1482_v8  ;;  %v1500_v23 = vadd.f32 %v1492_v20, %v1484_v31  ;;  %v1488_v29 = vadd.f32 %v1480_v12, %v1464_v3  ;;  %v1493_v11 = vadd.f32 %v914_v15, %v798_v42 }
 0x25b   : > { %v1483_v32 = vadd.f32 %v2639_v58, %v1459_v59  ;;  %v1485_v40 = vadd.f32 %v1472_v13, %v1461_v7  ;;  %v1487_v24 = vadd.f32 %v1476_v56, %v1463_v30  ;;  %v1502_v50 = vadd.f32 %v1494_v10, %v1486_v16 }
 0x25c   : > { %v1506_v14 = vadd.f32 %v1500_v23, %v1498_v22  ;;  %v1495_v41 = vadd.f32 %v916_v18, %v800_v27  ;;  %v1489_v60 = vadd.f32 %v1480_v12, %v1465_v53  ;;  %v1504_v9 = vadd.f32 %v1496_v28, %v1488_v29 }
 0x25d   : > { %v1499_v48 = vadd.f32 %v1491_v21, %v1483_v32  ;;  %v1501_v1 = vadd.f32 %v1493_v11, %v1485_v40  ;;  %v1497_v43 = vadd.f32 %v918_v39, %v802_v26  ;;  %v1580_v32 = vpop.permute.xlu1 %1579 }
 0x25e   : > { %v1507_v36 = vadd.f32 %v1506_v14, %v1502_v50  ;;  %v1503_v62 = vadd.f32 %v1495_v41, %v1487_v24 }
 0x25f   : > { %v1515_v63 = vadd.f32 %v1501_v1, %v1499_v48  ;;  %v1505_v46 = vadd.f32 %v1497_v43, %v1489_v60 }
 0x260   : > { %v1508_v57 = vadd.f32 %v1507_v36, %v1504_v9  ;;  %v1576_v36 = vpop.permute.xlu0 %1575 }
 0x261   : > { %v1516_v61 = vadd.f32 %v1515_v63, %v1503_v62 }
 0x262   : > { %v1509_v58 = vrot.slane %v1508_v57, 4 }
 0x263   : > { %v1517_v13 = vadd.f32 %v1516_v61, %v1505_v46 }
 0x264   : > { %v1510_v56 = vadd.f32 %v1509_v58, %v1508_v57  ;;  %v1588_v43 = vpop.permute.xlu0 %1587 }
 0x265   : > { %v1518_v42 = vrot.slane %v1517_v13, 4 }
 0x266   : > { %v1511_v19 = vrot.slane %v1510_v56, 2 }
 0x267   : > { %v1519_v51 = vadd.f32 %v1518_v42, %v1517_v13 }
 0x268   : > { %v1512_v25 = vadd.f32 %v1511_v19, %v1510_v56  ;;  %v1604_v58 = vpop.permute.xlu0 %1603 }
 0x269   : > { %v1520_v34 = vrot.slane %v1519_v51, 2 }
 0x26a   : > { %v1513_v27 = vrot.slane %v1512_v25, 1 }
 0x26b   : > { %v1521_v17 = vadd.f32 %v1520_v34, %v1519_v51 }
 0x26c   : > { %v1514_v54 = vadd.f32 %v1513_v27, %v1512_v25 }
 0x26d   : > { %v1522_v20 = vrot.slane %v1521_v17, 1 }
 0x26e   : > { %v1524_v49 = vmul.f32 0.03125, %v1514_v54 }
 0x26f   : > { %v1523_v45 = vadd.f32 %v1522_v20, %v1521_v17 }
 0x270   : > { %v1530_v35 = vsub.f32 %v1502_v50, %v1524_v49  ;;  %v1526_v5 = vsub.f32 %v1498_v22, %v1524_v49  ;;  %v1528_v2 = vsub.f32 %v1500_v23, %v1524_v49  ;;  %v1532_v38 = vsub.f32 %v1504_v9, %v1524_v49 }
 0x271   : > { %v1525_v4 = vmul.f32 0.03125, %v1523_v45 }
 0x272   : > { %v1534_v15 = vmul.f32 %v1526_v5, %v1526_v5  ;;  %v1536_v18 = vmul.f32 %v1528_v2, %v1528_v2  ;;  %v1538_v6 = vmul.f32 %v1530_v35, %v1530_v35  ;;  %v1540_v37 = vmul.f32 %v1532_v38, %v1532_v38 }
 0x273   : > { %v1531_v10 = vsub.f32 %v1503_v62, %v1525_v4  ;;  %v1527_v47 = vsub.f32 %v1499_v48, %v1525_v4  ;;  %v1529_v55 = vsub.f32 %v1501_v1, %v1525_v4  ;;  %v1533_v3 = vsub.f32 %v1505_v46, %v1525_v4  ;;  %v1584_v48 = vpop.permute.xlu1 %1583 }
 0x274   : > { %v1542_v52 = vadd.f32 %v1536_v18, %v1534_v15 }
 0x275   : > { %v1535_v0 = vmul.f32 %v1527_v47, %v1527_v47  ;;  %v1537_v44 = vmul.f32 %v1529_v55, %v1529_v55  ;;  %v1539_v12 = vmul.f32 %v1531_v10, %v1531_v10  ;;  %v1541_v31 = vmul.f32 %v1533_v3, %v1533_v3 }
 0x276   : > { %v1543_v33 = vadd.f32 %v1542_v52, %v1538_v6 }
 0x277   : > { %v1551_v39 = vadd.f32 %v1537_v44, %v1535_v0  ;;  %v1600_v60 = vpop.permute.xlu1 %1599 }
 0x278   : > { %v1544_v8 = vadd.f32 %v1543_v33, %v1540_v37 }
 0x279   : > { %v1552_v16 = vadd.f32 %v1551_v39, %v1539_v12 }
 0x27a   : > { %v1545_v59 = vrot.slane %v1544_v8, 4 }
 0x27b   : > { %v1553_v7 = vadd.f32 %v1552_v16, %v1541_v31  ;;  %v1608_v9 = vpop.permute.xlu1 %1607 }
 0x27c   : > { %v1546_v30 = vadd.f32 %v1545_v59, %v1544_v8 }
 0x27d   : > { %v1554_v53 = vrot.slane %v1553_v7, 4 }
 0x27e   : > { %v1547_v21 = vrot.slane %v1546_v30, 2 }
 0x27f   : > { %v1555_v22 = vadd.f32 %v1554_v53, %v1553_v7  ;;  %v1612_v54 = vpop.permute.xlu1 %1611 }
 0x280   : > { %v1548_v23 = vadd.f32 %v1547_v21, %v1546_v30 }
 0x281   : > { %v1556_v29 = vrot.slane %v1555_v22, 2 }
 0x282   : > { %v1549_v11 = vrot.slane %v1548_v23, 1 }
 0x283   : > { %v1557_v40 = vadd.f32 %v1556_v29, %v1555_v22 }
 0x284   : > { %v1550_v24 = vadd.f32 %v1549_v11, %v1548_v23 }
 0x285   : > { %v1558_v26 = vrot.slane %v1557_v40, 1 }
 0x286   : > { %v1560_v28 = vmul.f32 0.03125, %v1550_v24 }
 0x287   : > { %v1559_v14 = vadd.f32 %v1558_v26, %v1557_v40 }
 0x288   : > { %v1562_v50 = vadd.f32 1e-12, %v1560_v28 }
 0x289   : > { %v1561_v41 = vmul.f32 0.03125, %v1559_v14 }
 0x28a   : > { %1927 = vrsqrt.f32 %v1562_v50 }
 0x28b   : > { %v1563_v1 = vadd.f32 1e-12, %v1561_v41 }
 0x28d   : > { %1929 = vrsqrt.f32 %v1563_v1 }
 0x297   : > { %v1928_v63 = vpop.eup %1927 }
 0x298   : > { %v1568_v62 = vmul.f32 %v1928_v63, %v1528_v2  ;;  %v1570_v57 = vmul.f32 %v1928_v63, %v1530_v35  ;;  %v1566_v61 = vmul.f32 %v1928_v63, %v1526_v5  ;;  %v1572_v46 = vmul.f32 %v1928_v63, %v1532_v38 }
 0x29a   : > { %v1930_v13 = vpop.eup %1929  ;;  %v1592_v56 = vmul.f32 %v1580_v32, %v1568_v62  ;;  %v1594_v42 = vmul.f32 %v1584_v48, %v1570_v57  ;;  %v1590_v19 = vmul.f32 %v1576_v36, %v1566_v61  ;;  %v1596_v51 = vmul.f32 %v1588_v43, %v1572_v46 }
 0x29b   : > { %v1569_v25 = vmul.f32 %v1930_v13, %v1529_v55  ;;  %v1571_v34 = vmul.f32 %v1930_v13, %v1531_v10  ;;  %v1567_v27 = vmul.f32 %v1930_v13, %v1527_v47  ;;  %v1573_v17 = vmul.f32 %v1930_v13, %v1533_v3 }
 0x29c   : > { %v1614_v20 = vadd.f32 %v1600_v60, %v1590_v19  ;;  %v1618_v49 = vadd.f32 %v1608_v9, %v1594_v42  ;;  %v1620_v45 = vadd.f32 %v1612_v54, %v1596_v51  ;;  %v1616_v35 = vadd.f32 %v1604_v58, %v1592_v56 }
 0x29d   : > { %v1593_v5 = vmul.f32 %v1580_v32, %v1569_v25  ;;  %v1595_v2 = vmul.f32 %v1584_v48, %v1571_v34  ;;  %v1591_v4 = vmul.f32 %v1576_v36, %v1567_v27  ;;  %v1597_v38 = vmul.f32 %v1588_v43, %v1573_v17 }
 0x29e   : > { %1622 = vst [vmem:[%s380_s8] sm:$0xff] %v1614_v20  ;;  %1626 = vst [vmem:[%s380_s8 + $0x20] sm:$0xff] %v1618_v49 }
 0x29f   : > { %1628 = vst [vmem:[%s380_s8 + $0x30] sm:$0xff] %v1620_v45  ;;  %1624 = vst [vmem:[%s380_s8 + $0x10] sm:$0xff] %v1616_v35  ;;  %v1615_v15 = vadd.f32 %v1600_v60, %v1591_v4  ;;  %v1619_v18 = vadd.f32 %v1608_v9, %v1595_v2  ;;  %v1621_v10 = vadd.f32 %v1612_v54, %v1597_v38 }
 0x2a0   : > { %v1617_v47 = vadd.f32 %v1604_v58, %v1593_v5 }
 0x2a1   : > { %1623 = vst [vmem:[%s380_s8 + $0x8] sm:$0xff] %v1615_v15  ;;  %1627 = vst [vmem:[%s380_s8 + $0x28] sm:$0xff] %v1619_v18 }
 0x2a2   : > { %1629 = vst [vmem:[%s380_s8 + $0x38] sm:$0xff] %v1621_v10  ;;  %1625 = vst [vmem:[%s380_s8 + $0x18] sm:$0xff] %v1617_v47 }
 0x2a3   : > { %1944 = shalt.err (!%p1941_p7)
}
 0x2a4   : > { %s1945_s21 = scalar_lea.hbm %s2708_s14, 1024  ;;  %s1949_s8 = scalar_lea.hbm %s2758_s7, 2048 }
 0x2a5   : > { %p1946_p10 = scmp.ne.s32.totalorder %s2708_s14, %s1945_s21  ;;  %p1950_p13 = scmp.lt.s32.totalorder %s2708_s14, %s2758_s7 }
 0x2a6   : > { %p1951_p0 = scmp.lt.s32.totalorder %s1949_s8, %s1945_s21 }
 0x2a7   : > { %p1947_p11 = pnand %p1946_p10, %p2089_p6 }
 0x2a8   : > { %p1952_p1 = por %p1951_p0, %p1950_p13 }
 0x2a9   : > { %p1948_p12 = pneg %p1947_p11 }
 0x2ab   : > { %p1953_p2 = pnand %p1952_p1, %p1948_p12 }
 0x2ad   : > { %1956 = shalt.err (!%p1953_p2)
}
 0x2ae   : > { %s2007_s28 = smov 256   ;;  %s2008_s16 = smov 512  }
 0x2af   : > { %s2009_s17 = smov 16  }
 0x2b0   : > { %1798 = dma.vmem_to_hbm [thread:$0]  (%p2089_p6), %s2703_s23, 1024, %s2708_s14, %s1631_s15, %s2007_s28, %s2008_s16, %s2009_s17  }
 0x2b1 PF: > { %s1659_s18 = sand.u32 1, %s1979_s24   ;;  %p1801_p3 = pnand %p1726_p9, %p2093_p8 }
 0x2b2   : > { %s1660_s19 = scalar_lea.sflag [#allocation4], %s1659_s18 }
 0x2b3   : > { %p1802_p4 = pneg %p1801_p3 }
 0x2b5   : > { %1974 = dma.done.wait (%p1802_p4), %s1660_s19, 1024  }
 0x2b6   : > { %1976 = vsyncadd (%p1802_p4), %s1660_s19, 4294966272  ;;  %p17_p5 = scmp.ge.s32.totalorder %s2075_s30, 4   ;;  %s2761_s24 = smov %s1983_s25 }
 0x2b7   : > { %s2762_s25 = smov %s1987_s26  ;;  %s2763_s26 = smov %s2087_s10 }
 0x2b8   : > { %s2764_s27 = smov %s2075_s30  ;;  %19 = sbr.rel (!%p17_p5) target bundleno = 3 (0x3), region = 129 }
 0x2bd   :  { %1665 = vsyncpa [#allocation4], 1 }
 0x2be   :  { %1667 = vsyncpa [#allocation4 + $0x1], 1 }

</bundles_post_ra>
